<compile_context>
chip_gen: v5e
topology: v5e:2x2
jax: 0.10.0
libtpu: 0.0.40
codegen_flags: <defaults>
</compile_context>

<pallas_src>
import functools

import jax
import jax.numpy as jnp
import numpy as np
from jax.experimental import pallas as pl
from jax.experimental.pallas import tpu as pltpu

GN_GROUPS = 4
GN_EPS = 1e-5


# ----------------------------------------------------------------------------
# in-kernel helper: GroupNorm on a 2-D slab whose groups are contiguous row blocks
# ----------------------------------------------------------------------------
def _gn_rows(y, gamma, beta, groups, eps):
    """y: (R, N); rows [g*rpg, (g+1)*rpg) form group g. gamma/beta: (R, 1)."""
    R, N = y.shape
    rpg = R // groups
    inv_cnt = 1.0 / float(rpg * N)
    s = jnp.sum(y, axis=1, keepdims=True)           # (R, 1)
    ss = jnp.sum(y * y, axis=1, keepdims=True)      # (R, 1)
    if rpg > 1:
        # aggregate per-row stats within each contiguous group (tiny tensors).
        s = jnp.broadcast_to(
            jnp.sum(s.reshape(groups, rpg), axis=1, keepdims=True),
            (groups, rpg)).reshape(R, 1)
        ss = jnp.broadcast_to(
            jnp.sum(ss.reshape(groups, rpg), axis=1, keepdims=True),
            (groups, rpg)).reshape(R, 1)
    mean = s * inv_cnt
    var = ss * inv_cnt - mean * mean                # single-pass stats
    inv = jax.lax.rsqrt(var + eps)                  # EUP
    return (y - mean) * (inv * gamma) + beta


# ----------------------------------------------------------------------------
# fused kernel: [Conv(k,same)+GN+ReLU] x L  ->  x + (Lin+GN+ReLU+Lin+GN+ReLU)(x)
# activation layout: (C, H*W) with H*W on the lane dimension (256 lanes).
# ----------------------------------------------------------------------------
def _tfc_tdff_kernel(x_ref, mask_ref, cw_ref, cb_ref, cgw_ref, cgb_ref,
                     w1_ref, b1_ref, g1w_ref, g1b_ref,
                     w2_ref, b2_ref, g2w_ref, g2b_ref,
                     o_ref, *, num_layers, k, H, W, groups, eps):
    HW = H * W
    p = k // 2
    a = x_ref[0]                                    # (C, H*W), lane-dense

    # tap table: (flat lane shift, validity mask) per conv tap (loaded once).
    taps = []
    for dy in range(k):
        for dx in range(k):
            t = dy * k + dx
            off = (dy - p) * W + (dx - p)           # shift on flattened (h*W + w)
            taps.append((t, off, mask_ref[t]))      # mask: (1, HW)

    # ---- tfc: L x (Conv2d "same" + GroupNorm + ReLU), activation stays resident
    for l in range(num_layers):
        acc = None
        for t, off, m in taps:
            # shifted[:, h*W+w] == a[:, (h+dy-p)*W + (w+dx-p)]; the mask zeroes
            # wrapped / out-of-image entries => implicit zero padding.
            shifted = a if off == 0 else pltpu.roll(a, (-off) % HW, axis=1)
            piece = shifted * m                     # (C, HW)
            contrib = jnp.dot(cw_ref[l, t], piece,  # (Cout,Cin)@(Cin,HW) on MXU
                              preferred_element_type=jnp.float32)
            acc = contrib if acc is None else acc + contrib
        y = acc + cb_ref[l]                         # bias (C, 1)
        a = jnp.maximum(_gn_rows(y, cgw_ref[l], cgb_ref[l], groups, eps), 0.0)

    # ---- tdf: Linear(F->Fb)+GN+ReLU + Linear(Fb->F)+GN+ReLU, fused residual.
    # Linears act per (c, t) row of the flattened slab via block-diagonal
    # kron(I_H, W^T) weights -> single lane-dense matmuls, no reshapes.
    h = jnp.dot(a, w1_ref[...], preferred_element_type=jnp.float32) + b1_ref[...]
    h = jnp.maximum(_gn_rows(h, g1w_ref[...], g1b_ref[...], groups, eps), 0.0)
    h = jnp.dot(h, w2_ref[...], preferred_element_type=jnp.float32) + b2_ref[...]
    h = jnp.maximum(_gn_rows(h, g2w_ref[...], g2b_ref[...], groups, eps), 0.0)

    o_ref[0] = a + h                                # x + tdf(x), 256-lane store


def tfc_tdff_pallas(x, params, k, groups=GN_GROUPS):
    """x: (B, C, T, F) float32, NCHW like the PyTorch module."""
    B, C, H, W = x.shape
    assert C % groups == 0, "GroupNorm requires C % groups == 0"
    HW = H * W
    L = len(params["tfc"])
    p = k // 2
    td = params["tdf"]
    Fb = td["w1"].shape[0]

    # conv weights -> (L, k*k, Cout, Cin), taps ordered t = dy*k + dx
    cw = jnp.stack([jnp.transpose(lyr["w"], (2, 3, 0, 1)).reshape(k * k, C, C)
                    for lyr in params["tfc"]])
    cb = jnp.stack([lyr["b"] for lyr in params["tfc"]]).reshape(L, C, 1)
    cgw = jnp.stack([lyr["gw"] for lyr in params["tfc"]]).reshape(L, C, 1)
    cgb = jnp.stack([lyr["gb"] for lyr in params["tfc"]]).reshape(L, C, 1)

    # per-tap validity masks on the flattened (h*W + w) lane axis: implements the
    # "same" zero padding without a jnp.pad HBM pass or an in-kernel pad buffer.
    ii = np.arange(HW)
    hh, ww = ii // W, ii % W
    masks = np.zeros((k * k, 1, HW), np.float32)
    for dy in range(k):
        for dx in range(k):
            sh, sw = dy - p, dx - p
            ok = ((hh + sh >= 0) & (hh + sh < H) &
                  (ww + sw >= 0) & (ww + sw < W))
            masks[dy * k + dx, 0, :] = ok.astype(np.float32)
    masks = jnp.asarray(masks)

    # tdf Linears as block-diagonal matmuls acting on the flattened (C, H*F) slab.
    eye_h = jnp.eye(H, dtype=jnp.float32)
    w1d = jnp.kron(eye_h, jnp.transpose(td["w1"]))      # (H*F, H*Fb)
    w2d = jnp.kron(eye_h, jnp.transpose(td["w2"]))      # (H*Fb, H*F)
    b1d = jnp.tile(td["b1"], H).reshape(1, H * Fb)
    b2d = jnp.tile(td["b2"], H).reshape(1, HW)
    g1w, g1b = td["g1w"].reshape(C, 1), td["g1b"].reshape(C, 1)
    g2w, g2b = td["g2w"].reshape(C, 1), td["g2b"].reshape(C, 1)

    x_flat = x.reshape(B, C, HW)                        # free metadata reshape

    kernel = functools.partial(_tfc_tdff_kernel, num_layers=L, k=k, H=H, W=W,
                               groups=groups, eps=GN_EPS)
    out_flat = pl.pallas_call(
        kernel,
        out_shape=jax.ShapeDtypeStruct((B, C, HW), jnp.float32),
        grid=(B,),
        in_specs=[
            pl.BlockSpec((1, C, HW), lambda i: (i, 0, 0)),          # x (per sample)
            pl.BlockSpec((k * k, 1, HW), lambda i: (0, 0, 0)),      # tap masks
            pl.BlockSpec((L, k * k, C, C), lambda i: (0, 0, 0, 0)),  # conv W
            pl.BlockSpec((L, C, 1), lambda i: (0, 0, 0)),           # conv b
            pl.BlockSpec((L, C, 1), lambda i: (0, 0, 0)),           # conv GN gamma
            pl.BlockSpec((L, C, 1), lambda i: (0, 0, 0)),           # conv GN beta
            pl.BlockSpec((HW, H * Fb), lambda i: (0, 0)),           # tdf W1 (blkdiag)
            pl.BlockSpec((1, H * Fb), lambda i: (0, 0)),            # tdf b1 (tiled)
            pl.BlockSpec((C, 1), lambda i: (0, 0)),                 # tdf GN1 gamma
            pl.BlockSpec((C, 1), lambda i: (0, 0)),                 # tdf GN1 beta
            pl.BlockSpec((H * Fb, HW), lambda i: (0, 0)),           # tdf W2 (blkdiag)
            pl.BlockSpec((1, HW), lambda i: (0, 0)),                # tdf b2 (tiled)
            pl.BlockSpec((C, 1), lambda i: (0, 0)),                 # tdf GN2 gamma
            pl.BlockSpec((C, 1), lambda i: (0, 0)),                 # tdf GN2 beta
        ],
        out_specs=pl.BlockSpec((1, C, HW), lambda i: (i, 0, 0)),
        compiler_params=pltpu.CompilerParams(
            dimension_semantics=("parallel",)),   # both v7x TCs busy with B=2
    )(x_flat, masks, cw, cb, cgw, cgb,
      w1d, b1d, g1w, g1b, w2d, b2d, g2w, g2b)

    return out_flat.reshape(B, C, H, W)


# ----------------------------------------------------------------------------
# pure-JAX reference (high precision) + parameter init
# ----------------------------------------------------------------------------
def _group_norm_ref(x, gamma, beta, groups=GN_GROUPS, eps=GN_EPS):
    B, C = x.shape[0], x.shape[1]
    xg = x.reshape(B, groups, -1)
    mean = xg.mean(-1, keepdims=True)
    var = ((xg - mean) ** 2).mean(-1, keepdims=True)
    xn = ((xg - mean) / jnp.sqrt(var + eps)).reshape(x.shape)
    bshape = (1, C) + (1,) * (x.ndim - 2)
    return xn * gamma.reshape(bshape) + beta.reshape(bshape)


def tfc_tdff_ref(x, params, k):
    hp = jax.lax.Precision.HIGHEST
    p = k // 2
    for layer in params["tfc"]:
        y = jax.lax.conv_general_dilated(
            x, layer["w"], (1, 1), [(p, p), (p, p)],
            dimension_numbers=("NCHW", "OIHW", "NCHW"), precision=hp)
        y = y + layer["b"].reshape(1, -1, 1, 1)
        y = _group_norm_ref(y, layer["gw"], layer["gb"])
        x = jnp.maximum(y, 0.0)
    t = params["tdf"]
    h = jnp.einsum("bchf,gf->bchg", x, t["w1"], precision=hp) + t["b1"]
    h = jnp.maximum(_group_norm_ref(h, t["g1w"], t["g1b"]), 0.0)
    h = jnp.einsum("bchg,fg->bchf", h, t["w2"], precision=hp) + t["b2"]
    h = jnp.maximum(_group_norm_ref(h, t["g2w"], t["g2b"]), 0.0)
    return x + h


def init_params(key, c, l, f, k, bn):
    keys = jax.random.split(key, 4 * l + 8)
    ki = iter(range(len(keys)))
    tfc = []
    for _ in range(l):
        tfc.append(dict(
            w=0.2 * jax.random.normal(keys[next(ki)], (c, c, k, k), jnp.float32),
            b=0.1 * jax.random.normal(keys[next(ki)], (c,), jnp.float32),
            gw=1.0 + 0.1 * jax.random.normal(keys[next(ki)], (c,), jnp.float32),
            gb=0.1 * jax.random.normal(keys[next(ki)], (c,), jnp.float32),
        ))
    fb = f // bn
    tdf = dict(
        w1=0.2 * jax.random.normal(keys[next(ki)], (fb, f), jnp.float32),
        b1=0.1 * jax.random.normal(keys[next(ki)], (fb,), jnp.float32),
        g1w=1.0 + 0.1 * jax.random.normal(keys[next(ki)], (c,), jnp.float32),
        g1b=0.1 * jax.random.normal(keys[next(ki)], (c,), jnp.float32),
        w2=0.2 * jax.random.normal(keys[next(ki)], (f, fb), jnp.float32),
        b2=0.1 * jax.random.normal(keys[next(ki)], (f,), jnp.float32),
        g2w=1.0 + 0.1 * jax.random.normal(keys[next(ki)], (c,), jnp.float32),
        g2b=0.1 * jax.random.normal(keys[next(ki)], (c,), jnp.float32),
    )
    return {"tfc": tfc, "tdf": tdf}


if __name__ == "__main__":
    # TFC_TDFF(c=4, l=2, f=16, k=3, bn=2, dense=False, bias=True)
    B, C, T, F = 2, 4, 16, 16
    L, K, BN = 2, 3, 2

    key = jax.random.PRNGKey(0)
    kx, kp = jax.random.split(key)
    x = jax.random.normal(kx, (B, C, T, F), jnp.float32)
    params = init_params(kp, C, L, F, K, BN)

    out = jax.block_until_ready(tfc_tdff_pallas(x, params, K))
    ref = jax.block_until_ready(tfc_tdff_ref(x, params, K))

    # tightened from 3e-2; residual slack covers EUP rsqrt / MXU f32-pass
    # differences between the kernel and the XLA reference.
    np.testing.assert_allclose(np.asarray(out), np.asarray(ref),
                               rtol=1e-3, atol=1e-3)
    assert out.shape == (B, C, T, F) and out.dtype == jnp.float32

    print("KERNEL_OK")
</pallas_src>

<mosaic_0001>
module attributes {stable_mosaic.version = 11 : i64} {
  func.func @_tfc_tdff_kernel(%arg0: i32, %arg1: memref<1x4x256xf32, #tpu.memory_space<vmem>>, %arg2: memref<9x1x256xf32, #tpu.memory_space<vmem>>, %arg3: memref<2x9x4x4xf32, #tpu.memory_space<vmem>>, %arg4: memref<2x4x1xf32, #tpu.memory_space<vmem>>, %arg5: memref<2x4x1xf32, #tpu.memory_space<vmem>>, %arg6: memref<2x4x1xf32, #tpu.memory_space<vmem>>, %arg7: memref<256x128xf32, #tpu.memory_space<vmem>>, %arg8: memref<1x128xf32, #tpu.memory_space<vmem>>, %arg9: memref<4x1xf32, #tpu.memory_space<vmem>>, %arg10: memref<4x1xf32, #tpu.memory_space<vmem>>, %arg11: memref<128x256xf32, #tpu.memory_space<vmem>>, %arg12: memref<1x256xf32, #tpu.memory_space<vmem>>, %arg13: memref<4x1xf32, #tpu.memory_space<vmem>>, %arg14: memref<4x1xf32, #tpu.memory_space<vmem>>, %arg15: memref<1x4x256xf32, #tpu.memory_space<vmem>>) attributes {dimension_semantics = [#tpu.dimension_semantics<parallel>], iteration_bounds = array<i64: 2>, scalar_prefetch = 0 : i64, scratch_operands = 0 : i64, tpu.core_type = #tpu.core_type<tc>, window_params = [{transform_indices = @transform_0, window_bounds = array<i64: 1, 4, 256>}, {pipeline_mode = #tpu.pipeline_mode<synchronous>, transform_indices = @transform_1, window_bounds = array<i64: 9, 1, 256>}, {pipeline_mode = #tpu.pipeline_mode<synchronous>, transform_indices = @transform_2, window_bounds = array<i64: 2, 9, 4, 4>}, {pipeline_mode = #tpu.pipeline_mode<synchronous>, transform_indices = @transform_3, window_bounds = array<i64: 2, 4, 1>}, {pipeline_mode = #tpu.pipeline_mode<synchronous>, transform_indices = @transform_4, window_bounds = array<i64: 2, 4, 1>}, {pipeline_mode = #tpu.pipeline_mode<synchronous>, transform_indices = @transform_5, window_bounds = array<i64: 2, 4, 1>}, {pipeline_mode = #tpu.pipeline_mode<synchronous>, transform_indices = @transform_6, window_bounds = array<i64: 256, 128>}, {pipeline_mode = #tpu.pipeline_mode<synchronous>, transform_indices = @transform_7, window_bounds = array<i64: 1, 128>}, {pipeline_mode = #tpu.pipeline_mode<synchronous>, transform_indices = @transform_8, window_bounds = array<i64: 4, 1>}, {pipeline_mode = #tpu.pipeline_mode<synchronous>, transform_indices = @transform_9, window_bounds = array<i64: 4, 1>}, {pipeline_mode = #tpu.pipeline_mode<synchronous>, transform_indices = @transform_10, window_bounds = array<i64: 128, 256>}, {pipeline_mode = #tpu.pipeline_mode<synchronous>, transform_indices = @transform_11, window_bounds = array<i64: 1, 256>}, {pipeline_mode = #tpu.pipeline_mode<synchronous>, transform_indices = @transform_12, window_bounds = array<i64: 4, 1>}, {pipeline_mode = #tpu.pipeline_mode<synchronous>, transform_indices = @transform_13, window_bounds = array<i64: 4, 1>}, {transform_indices = @transform_14, window_bounds = array<i64: 1, 4, 256>}]} {
    %c0 = arith.constant 0 : index
    %c0_0 = arith.constant 0 : index
    %c0_1 = arith.constant 0 : index
    %0 = vector.load %arg1[%c0, %c0_0, %c0_1] : memref<1x4x256xf32, #tpu.memory_space<vmem>>, vector<1x4x256xf32>
    %1 = vector.shape_cast %0 : vector<1x4x256xf32> to vector<4x256xf32>
    %c0_2 = arith.constant 0 : index
    %c0_3 = arith.constant 0 : index
    %c0_4 = arith.constant 0 : index
    %2 = vector.load %arg2[%c0_2, %c0_3, %c0_4] : memref<9x1x256xf32, #tpu.memory_space<vmem>>, vector<1x1x256xf32>
    %3 = vector.shape_cast %2 : vector<1x1x256xf32> to vector<1x256xf32>
    %c1 = arith.constant 1 : index
    %c0_5 = arith.constant 0 : index
    %c0_6 = arith.constant 0 : index
    %4 = vector.load %arg2[%c1, %c0_5, %c0_6] : memref<9x1x256xf32, #tpu.memory_space<vmem>>, vector<1x1x256xf32>
    %5 = vector.shape_cast %4 : vector<1x1x256xf32> to vector<1x256xf32>
    %c2 = arith.constant 2 : index
    %c0_7 = arith.constant 0 : index
    %c0_8 = arith.constant 0 : index
    %6 = vector.load %arg2[%c2, %c0_7, %c0_8] : memref<9x1x256xf32, #tpu.memory_space<vmem>>, vector<1x1x256xf32>
    %7 = vector.shape_cast %6 : vector<1x1x256xf32> to vector<1x256xf32>
    %c3 = arith.constant 3 : index
    %c0_9 = arith.constant 0 : index
    %c0_10 = arith.constant 0 : index
    %8 = vector.load %arg2[%c3, %c0_9, %c0_10] : memref<9x1x256xf32, #tpu.memory_space<vmem>>, vector<1x1x256xf32>
    %9 = vector.shape_cast %8 : vector<1x1x256xf32> to vector<1x256xf32>
    %c4 = arith.constant 4 : index
    %c0_11 = arith.constant 0 : index
    %c0_12 = arith.constant 0 : index
    %10 = vector.load %arg2[%c4, %c0_11, %c0_12] : memref<9x1x256xf32, #tpu.memory_space<vmem>>, vector<1x1x256xf32>
    %11 = vector.shape_cast %10 : vector<1x1x256xf32> to vector<1x256xf32>
    %c5 = arith.constant 5 : index
    %c0_13 = arith.constant 0 : index
    %c0_14 = arith.constant 0 : index
    %12 = vector.load %arg2[%c5, %c0_13, %c0_14] : memref<9x1x256xf32, #tpu.memory_space<vmem>>, vector<1x1x256xf32>
    %13 = vector.shape_cast %12 : vector<1x1x256xf32> to vector<1x256xf32>
    %c6 = arith.constant 6 : index
    %c0_15 = arith.constant 0 : index
    %c0_16 = arith.constant 0 : index
    %14 = vector.load %arg2[%c6, %c0_15, %c0_16] : memref<9x1x256xf32, #tpu.memory_space<vmem>>, vector<1x1x256xf32>
    %15 = vector.shape_cast %14 : vector<1x1x256xf32> to vector<1x256xf32>
    %c7 = arith.constant 7 : index
    %c0_17 = arith.constant 0 : index
    %c0_18 = arith.constant 0 : index
    %16 = vector.load %arg2[%c7, %c0_17, %c0_18] : memref<9x1x256xf32, #tpu.memory_space<vmem>>, vector<1x1x256xf32>
    %17 = vector.shape_cast %16 : vector<1x1x256xf32> to vector<1x256xf32>
    %c8 = arith.constant 8 : index
    %c0_19 = arith.constant 0 : index
    %c0_20 = arith.constant 0 : index
    %18 = vector.load %arg2[%c8, %c0_19, %c0_20] : memref<9x1x256xf32, #tpu.memory_space<vmem>>, vector<1x1x256xf32>
    %19 = vector.shape_cast %18 : vector<1x1x256xf32> to vector<1x256xf32>
    %c17_i32 = arith.constant 17 : i32
    %20 = tpu.dynamic_rotate %1 by %c17_i32 dim 1 : vector<4x256xf32>, i32 -> vector<4x256xf32>
    %21 = vector.broadcast %3 : vector<1x256xf32> to vector<4x256xf32>
    %22 = arith.mulf %20, %21 : vector<4x256xf32>
    %c0_21 = arith.constant 0 : index
    %c0_22 = arith.constant 0 : index
    %c0_23 = arith.constant 0 : index
    %c0_24 = arith.constant 0 : index
    %23 = vector.load %arg3[%c0_21, %c0_22, %c0_23, %c0_24] : memref<2x9x4x4xf32, #tpu.memory_space<vmem>>, vector<1x1x4x4xf32>
    %24 = vector.shape_cast %23 : vector<1x1x4x4xf32> to vector<4x4xf32>
    %cst = arith.constant dense<0.000000e+00> : vector<4x256xf32>
    %25 = tpu.matmul %24, %22, %cst {dimension_numbers = #tpu.dot_dimension_numbers<[1], [0], [0], [1], [0, 0, 1, 1], [], []>} : vector<4x4xf32>, vector<4x256xf32>, vector<4x256xf32> -> vector<4x256xf32>
    %c16_i32 = arith.constant 16 : i32
    %26 = tpu.dynamic_rotate %1 by %c16_i32 dim 1 : vector<4x256xf32>, i32 -> vector<4x256xf32>
    %27 = vector.broadcast %5 : vector<1x256xf32> to vector<4x256xf32>
    %28 = arith.mulf %26, %27 : vector<4x256xf32>
    %c0_25 = arith.constant 0 : index
    %c1_26 = arith.constant 1 : index
    %c0_27 = arith.constant 0 : index
    %c0_28 = arith.constant 0 : index
    %29 = vector.load %arg3[%c0_25, %c1_26, %c0_27, %c0_28] : memref<2x9x4x4xf32, #tpu.memory_space<vmem>>, vector<1x1x4x4xf32>
    %30 = vector.shape_cast %29 : vector<1x1x4x4xf32> to vector<4x4xf32>
    %cst_29 = arith.constant dense<0.000000e+00> : vector<4x256xf32>
    %31 = tpu.matmul %30, %28, %cst_29 {dimension_numbers = #tpu.dot_dimension_numbers<[1], [0], [0], [1], [0, 0, 1, 1], [], []>} : vector<4x4xf32>, vector<4x256xf32>, vector<4x256xf32> -> vector<4x256xf32>
    %32 = arith.addf %25, %31 : vector<4x256xf32>
    %c15_i32 = arith.constant 15 : i32
    %33 = tpu.dynamic_rotate %1 by %c15_i32 dim 1 : vector<4x256xf32>, i32 -> vector<4x256xf32>
    %34 = vector.broadcast %7 : vector<1x256xf32> to vector<4x256xf32>
    %35 = arith.mulf %33, %34 : vector<4x256xf32>
    %c0_30 = arith.constant 0 : index
    %c2_31 = arith.constant 2 : index
    %c0_32 = arith.constant 0 : index
    %c0_33 = arith.constant 0 : index
    %36 = vector.load %arg3[%c0_30, %c2_31, %c0_32, %c0_33] : memref<2x9x4x4xf32, #tpu.memory_space<vmem>>, vector<1x1x4x4xf32>
    %37 = vector.shape_cast %36 : vector<1x1x4x4xf32> to vector<4x4xf32>
    %cst_34 = arith.constant dense<0.000000e+00> : vector<4x256xf32>
    %38 = tpu.matmul %37, %35, %cst_34 {dimension_numbers = #tpu.dot_dimension_numbers<[1], [0], [0], [1], [0, 0, 1, 1], [], []>} : vector<4x4xf32>, vector<4x256xf32>, vector<4x256xf32> -> vector<4x256xf32>
    %39 = arith.addf %32, %38 : vector<4x256xf32>
    %c1_i32 = arith.constant 1 : i32
    %40 = tpu.dynamic_rotate %1 by %c1_i32 dim 1 : vector<4x256xf32>, i32 -> vector<4x256xf32>
    %41 = vector.broadcast %9 : vector<1x256xf32> to vector<4x256xf32>
    %42 = arith.mulf %40, %41 : vector<4x256xf32>
    %c0_35 = arith.constant 0 : index
    %c3_36 = arith.constant 3 : index
    %c0_37 = arith.constant 0 : index
    %c0_38 = arith.constant 0 : index
    %43 = vector.load %arg3[%c0_35, %c3_36, %c0_37, %c0_38] : memref<2x9x4x4xf32, #tpu.memory_space<vmem>>, vector<1x1x4x4xf32>
    %44 = vector.shape_cast %43 : vector<1x1x4x4xf32> to vector<4x4xf32>
    %cst_39 = arith.constant dense<0.000000e+00> : vector<4x256xf32>
    %45 = tpu.matmul %44, %42, %cst_39 {dimension_numbers = #tpu.dot_dimension_numbers<[1], [0], [0], [1], [0, 0, 1, 1], [], []>} : vector<4x4xf32>, vector<4x256xf32>, vector<4x256xf32> -> vector<4x256xf32>
    %46 = arith.addf %39, %45 : vector<4x256xf32>
    %47 = vector.broadcast %11 : vector<1x256xf32> to vector<4x256xf32>
    %48 = arith.mulf %1, %47 : vector<4x256xf32>
    %c0_40 = arith.constant 0 : index
    %c4_41 = arith.constant 4 : index
    %c0_42 = arith.constant 0 : index
    %c0_43 = arith.constant 0 : index
    %49 = vector.load %arg3[%c0_40, %c4_41, %c0_42, %c0_43] : memref<2x9x4x4xf32, #tpu.memory_space<vmem>>, vector<1x1x4x4xf32>
    %50 = vector.shape_cast %49 : vector<1x1x4x4xf32> to vector<4x4xf32>
    %cst_44 = arith.constant dense<0.000000e+00> : vector<4x256xf32>
    %51 = tpu.matmul %50, %48, %cst_44 {dimension_numbers = #tpu.dot_dimension_numbers<[1], [0], [0], [1], [0, 0, 1, 1], [], []>} : vector<4x4xf32>, vector<4x256xf32>, vector<4x256xf32> -> vector<4x256xf32>
    %52 = arith.addf %46, %51 : vector<4x256xf32>
    %c255_i32 = arith.constant 255 : i32
    %53 = tpu.dynamic_rotate %1 by %c255_i32 dim 1 : vector<4x256xf32>, i32 -> vector<4x256xf32>
    %54 = vector.broadcast %13 : vector<1x256xf32> to vector<4x256xf32>
    %55 = arith.mulf %53, %54 : vector<4x256xf32>
    %c0_45 = arith.constant 0 : index
    %c5_46 = arith.constant 5 : index
    %c0_47 = arith.constant 0 : index
    %c0_48 = arith.constant 0 : index
    %56 = vector.load %arg3[%c0_45, %c5_46, %c0_47, %c0_48] : memref<2x9x4x4xf32, #tpu.memory_space<vmem>>, vector<1x1x4x4xf32>
    %57 = vector.shape_cast %56 : vector<1x1x4x4xf32> to vector<4x4xf32>
    %cst_49 = arith.constant dense<0.000000e+00> : vector<4x256xf32>
    %58 = tpu.matmul %57, %55, %cst_49 {dimension_numbers = #tpu.dot_dimension_numbers<[1], [0], [0], [1], [0, 0, 1, 1], [], []>} : vector<4x4xf32>, vector<4x256xf32>, vector<4x256xf32> -> vector<4x256xf32>
    %59 = arith.addf %52, %58 : vector<4x256xf32>
    %c241_i32 = arith.constant 241 : i32
    %60 = tpu.dynamic_rotate %1 by %c241_i32 dim 1 : vector<4x256xf32>, i32 -> vector<4x256xf32>
    %61 = vector.broadcast %15 : vector<1x256xf32> to vector<4x256xf32>
    %62 = arith.mulf %60, %61 : vector<4x256xf32>
    %c0_50 = arith.constant 0 : index
    %c6_51 = arith.constant 6 : index
    %c0_52 = arith.constant 0 : index
    %c0_53 = arith.constant 0 : index
    %63 = vector.load %arg3[%c0_50, %c6_51, %c0_52, %c0_53] : memref<2x9x4x4xf32, #tpu.memory_space<vmem>>, vector<1x1x4x4xf32>
    %64 = vector.shape_cast %63 : vector<1x1x4x4xf32> to vector<4x4xf32>
    %cst_54 = arith.constant dense<0.000000e+00> : vector<4x256xf32>
    %65 = tpu.matmul %64, %62, %cst_54 {dimension_numbers = #tpu.dot_dimension_numbers<[1], [0], [0], [1], [0, 0, 1, 1], [], []>} : vector<4x4xf32>, vector<4x256xf32>, vector<4x256xf32> -> vector<4x256xf32>
    %66 = arith.addf %59, %65 : vector<4x256xf32>
    %c240_i32 = arith.constant 240 : i32
    %67 = tpu.dynamic_rotate %1 by %c240_i32 dim 1 : vector<4x256xf32>, i32 -> vector<4x256xf32>
    %68 = vector.broadcast %17 : vector<1x256xf32> to vector<4x256xf32>
    %69 = arith.mulf %67, %68 : vector<4x256xf32>
    %c0_55 = arith.constant 0 : index
    %c7_56 = arith.constant 7 : index
    %c0_57 = arith.constant 0 : index
    %c0_58 = arith.constant 0 : index
    %70 = vector.load %arg3[%c0_55, %c7_56, %c0_57, %c0_58] : memref<2x9x4x4xf32, #tpu.memory_space<vmem>>, vector<1x1x4x4xf32>
    %71 = vector.shape_cast %70 : vector<1x1x4x4xf32> to vector<4x4xf32>
    %cst_59 = arith.constant dense<0.000000e+00> : vector<4x256xf32>
    %72 = tpu.matmul %71, %69, %cst_59 {dimension_numbers = #tpu.dot_dimension_numbers<[1], [0], [0], [1], [0, 0, 1, 1], [], []>} : vector<4x4xf32>, vector<4x256xf32>, vector<4x256xf32> -> vector<4x256xf32>
    %73 = arith.addf %66, %72 : vector<4x256xf32>
    %c239_i32 = arith.constant 239 : i32
    %74 = tpu.dynamic_rotate %1 by %c239_i32 dim 1 : vector<4x256xf32>, i32 -> vector<4x256xf32>
    %75 = vector.broadcast %19 : vector<1x256xf32> to vector<4x256xf32>
    %76 = arith.mulf %74, %75 : vector<4x256xf32>
    %c0_60 = arith.constant 0 : index
    %c8_61 = arith.constant 8 : index
    %c0_62 = arith.constant 0 : index
    %c0_63 = arith.constant 0 : index
    %77 = vector.load %arg3[%c0_60, %c8_61, %c0_62, %c0_63] : memref<2x9x4x4xf32, #tpu.memory_space<vmem>>, vector<1x1x4x4xf32>
    %78 = vector.shape_cast %77 : vector<1x1x4x4xf32> to vector<4x4xf32>
    %cst_64 = arith.constant dense<0.000000e+00> : vector<4x256xf32>
    %79 = tpu.matmul %78, %76, %cst_64 {dimension_numbers = #tpu.dot_dimension_numbers<[1], [0], [0], [1], [0, 0, 1, 1], [], []>} : vector<4x4xf32>, vector<4x256xf32>, vector<4x256xf32> -> vector<4x256xf32>
    %80 = arith.addf %73, %79 : vector<4x256xf32>
    %c0_65 = arith.constant 0 : index
    %c0_66 = arith.constant 0 : index
    %c0_67 = arith.constant 0 : index
    %81 = vector.load %arg4[%c0_65, %c0_66, %c0_67] : memref<2x4x1xf32, #tpu.memory_space<vmem>>, vector<1x4x1xf32>
    %82 = vector.shape_cast %81 : vector<1x4x1xf32> to vector<4x1xf32>
    %83 = vector.broadcast %82 : vector<4x1xf32> to vector<4x256xf32>
    %84 = arith.addf %80, %83 : vector<4x256xf32>
    %c0_68 = arith.constant 0 : index
    %c0_69 = arith.constant 0 : index
    %c0_70 = arith.constant 0 : index
    %85 = vector.load %arg5[%c0_68, %c0_69, %c0_70] : memref<2x4x1xf32, #tpu.memory_space<vmem>>, vector<1x4x1xf32>
    %86 = vector.shape_cast %85 : vector<1x4x1xf32> to vector<4x1xf32>
    %c0_71 = arith.constant 0 : index
    %c0_72 = arith.constant 0 : index
    %c0_73 = arith.constant 0 : index
    %87 = vector.load %arg6[%c0_71, %c0_72, %c0_73] : memref<2x4x1xf32, #tpu.memory_space<vmem>>, vector<1x4x1xf32>
    %88 = vector.shape_cast %87 : vector<1x4x1xf32> to vector<4x1xf32>
    %cst_74 = arith.constant dense<0.000000e+00> : vector<4xf32>
    %89 = vector.multi_reduction <add>, %84, %cst_74 [1] : vector<4x256xf32> to vector<4xf32>
    %90 = vector.shape_cast %89 : vector<4xf32> to vector<4x1xf32>
    %91 = arith.mulf %84, %84 : vector<4x256xf32>
    %cst_75 = arith.constant dense<0.000000e+00> : vector<4xf32>
    %92 = vector.multi_reduction <add>, %91, %cst_75 [1] : vector<4x256xf32> to vector<4xf32>
    %93 = vector.shape_cast %92 : vector<4xf32> to vector<4x1xf32>
    %cst_76 = arith.constant 3.906250e-03 : f32
    %94 = vector.broadcast %cst_76 : f32 to vector<4x1xf32>
    %95 = arith.mulf %90, %94 : vector<4x1xf32>
    %cst_77 = arith.constant 3.906250e-03 : f32
    %96 = vector.broadcast %cst_77 : f32 to vector<4x1xf32>
    %97 = arith.mulf %93, %96 : vector<4x1xf32>
    %98 = arith.mulf %95, %95 : vector<4x1xf32>
    %99 = arith.subf %97, %98 : vector<4x1xf32>
    %cst_78 = arith.constant 9.99999974E-6 : f32
    %100 = vector.broadcast %cst_78 : f32 to vector<4x1xf32>
    %101 = arith.addf %99, %100 : vector<4x1xf32>
    %102 = math.rsqrt %101 : vector<4x1xf32>
    %103 = vector.broadcast %95 : vector<4x1xf32> to vector<4x256xf32>
    %104 = arith.subf %84, %103 : vector<4x256xf32>
    %105 = arith.mulf %102, %86 : vector<4x1xf32>
    %106 = vector.broadcast %105 : vector<4x1xf32> to vector<4x256xf32>
    %107 = arith.mulf %104, %106 : vector<4x256xf32>
    %108 = vector.broadcast %88 : vector<4x1xf32> to vector<4x256xf32>
    %109 = arith.addf %107, %108 : vector<4x256xf32>
    %cst_79 = arith.constant 0.000000e+00 : f32
    %110 = vector.broadcast %cst_79 : f32 to vector<4x256xf32>
    %111 = arith.maximumf %109, %110 : vector<4x256xf32>
    %c17_i32_80 = arith.constant 17 : i32
    %112 = tpu.dynamic_rotate %111 by %c17_i32_80 dim 1 : vector<4x256xf32>, i32 -> vector<4x256xf32>
    %113 = vector.broadcast %3 : vector<1x256xf32> to vector<4x256xf32>
    %114 = arith.mulf %112, %113 : vector<4x256xf32>
    %c1_81 = arith.constant 1 : index
    %c0_82 = arith.constant 0 : index
    %c0_83 = arith.constant 0 : index
    %c0_84 = arith.constant 0 : index
    %115 = vector.load %arg3[%c1_81, %c0_82, %c0_83, %c0_84] : memref<2x9x4x4xf32, #tpu.memory_space<vmem>>, vector<1x1x4x4xf32>
    %116 = vector.shape_cast %115 : vector<1x1x4x4xf32> to vector<4x4xf32>
    %cst_85 = arith.constant dense<0.000000e+00> : vector<4x256xf32>
    %117 = tpu.matmul %116, %114, %cst_85 {dimension_numbers = #tpu.dot_dimension_numbers<[1], [0], [0], [1], [0, 0, 1, 1], [], []>} : vector<4x4xf32>, vector<4x256xf32>, vector<4x256xf32> -> vector<4x256xf32>
    %c16_i32_86 = arith.constant 16 : i32
    %118 = tpu.dynamic_rotate %111 by %c16_i32_86 dim 1 : vector<4x256xf32>, i32 -> vector<4x256xf32>
    %119 = vector.broadcast %5 : vector<1x256xf32> to vector<4x256xf32>
    %120 = arith.mulf %118, %119 : vector<4x256xf32>
    %c1_87 = arith.constant 1 : index
    %c1_88 = arith.constant 1 : index
    %c0_89 = arith.constant 0 : index
    %c0_90 = arith.constant 0 : index
    %121 = vector.load %arg3[%c1_87, %c1_88, %c0_89, %c0_90] : memref<2x9x4x4xf32, #tpu.memory_space<vmem>>, vector<1x1x4x4xf32>
    %122 = vector.shape_cast %121 : vector<1x1x4x4xf32> to vector<4x4xf32>
    %cst_91 = arith.constant dense<0.000000e+00> : vector<4x256xf32>
    %123 = tpu.matmul %122, %120, %cst_91 {dimension_numbers = #tpu.dot_dimension_numbers<[1], [0], [0], [1], [0, 0, 1, 1], [], []>} : vector<4x4xf32>, vector<4x256xf32>, vector<4x256xf32> -> vector<4x256xf32>
    %124 = arith.addf %117, %123 : vector<4x256xf32>
    %c15_i32_92 = arith.constant 15 : i32
    %125 = tpu.dynamic_rotate %111 by %c15_i32_92 dim 1 : vector<4x256xf32>, i32 -> vector<4x256xf32>
    %126 = vector.broadcast %7 : vector<1x256xf32> to vector<4x256xf32>
    %127 = arith.mulf %125, %126 : vector<4x256xf32>
    %c1_93 = arith.constant 1 : index
    %c2_94 = arith.constant 2 : index
    %c0_95 = arith.constant 0 : index
    %c0_96 = arith.constant 0 : index
    %128 = vector.load %arg3[%c1_93, %c2_94, %c0_95, %c0_96] : memref<2x9x4x4xf32, #tpu.memory_space<vmem>>, vector<1x1x4x4xf32>
    %129 = vector.shape_cast %128 : vector<1x1x4x4xf32> to vector<4x4xf32>
    %cst_97 = arith.constant dense<0.000000e+00> : vector<4x256xf32>
    %130 = tpu.matmul %129, %127, %cst_97 {dimension_numbers = #tpu.dot_dimension_numbers<[1], [0], [0], [1], [0, 0, 1, 1], [], []>} : vector<4x4xf32>, vector<4x256xf32>, vector<4x256xf32> -> vector<4x256xf32>
    %131 = arith.addf %124, %130 : vector<4x256xf32>
    %c1_i32_98 = arith.constant 1 : i32
    %132 = tpu.dynamic_rotate %111 by %c1_i32_98 dim 1 : vector<4x256xf32>, i32 -> vector<4x256xf32>
    %133 = vector.broadcast %9 : vector<1x256xf32> to vector<4x256xf32>
    %134 = arith.mulf %132, %133 : vector<4x256xf32>
    %c1_99 = arith.constant 1 : index
    %c3_100 = arith.constant 3 : index
    %c0_101 = arith.constant 0 : index
    %c0_102 = arith.constant 0 : index
    %135 = vector.load %arg3[%c1_99, %c3_100, %c0_101, %c0_102] : memref<2x9x4x4xf32, #tpu.memory_space<vmem>>, vector<1x1x4x4xf32>
    %136 = vector.shape_cast %135 : vector<1x1x4x4xf32> to vector<4x4xf32>
    %cst_103 = arith.constant dense<0.000000e+00> : vector<4x256xf32>
    %137 = tpu.matmul %136, %134, %cst_103 {dimension_numbers = #tpu.dot_dimension_numbers<[1], [0], [0], [1], [0, 0, 1, 1], [], []>} : vector<4x4xf32>, vector<4x256xf32>, vector<4x256xf32> -> vector<4x256xf32>
    %138 = arith.addf %131, %137 : vector<4x256xf32>
    %139 = vector.broadcast %11 : vector<1x256xf32> to vector<4x256xf32>
    %140 = arith.mulf %111, %139 : vector<4x256xf32>
    %c1_104 = arith.constant 1 : index
    %c4_105 = arith.constant 4 : index
    %c0_106 = arith.constant 0 : index
    %c0_107 = arith.constant 0 : index
    %141 = vector.load %arg3[%c1_104, %c4_105, %c0_106, %c0_107] : memref<2x9x4x4xf32, #tpu.memory_space<vmem>>, vector<1x1x4x4xf32>
    %142 = vector.shape_cast %141 : vector<1x1x4x4xf32> to vector<4x4xf32>
    %cst_108 = arith.constant dense<0.000000e+00> : vector<4x256xf32>
    %143 = tpu.matmul %142, %140, %cst_108 {dimension_numbers = #tpu.dot_dimension_numbers<[1], [0], [0], [1], [0, 0, 1, 1], [], []>} : vector<4x4xf32>, vector<4x256xf32>, vector<4x256xf32> -> vector<4x256xf32>
    %144 = arith.addf %138, %143 : vector<4x256xf32>
    %c255_i32_109 = arith.constant 255 : i32
    %145 = tpu.dynamic_rotate %111 by %c255_i32_109 dim 1 : vector<4x256xf32>, i32 -> vector<4x256xf32>
    %146 = vector.broadcast %13 : vector<1x256xf32> to vector<4x256xf32>
    %147 = arith.mulf %145, %146 : vector<4x256xf32>
    %c1_110 = arith.constant 1 : index
    %c5_111 = arith.constant 5 : index
    %c0_112 = arith.constant 0 : index
    %c0_113 = arith.constant 0 : index
    %148 = vector.load %arg3[%c1_110, %c5_111, %c0_112, %c0_113] : memref<2x9x4x4xf32, #tpu.memory_space<vmem>>, vector<1x1x4x4xf32>
    %149 = vector.shape_cast %148 : vector<1x1x4x4xf32> to vector<4x4xf32>
    %cst_114 = arith.constant dense<0.000000e+00> : vector<4x256xf32>
    %150 = tpu.matmul %149, %147, %cst_114 {dimension_numbers = #tpu.dot_dimension_numbers<[1], [0], [0], [1], [0, 0, 1, 1], [], []>} : vector<4x4xf32>, vector<4x256xf32>, vector<4x256xf32> -> vector<4x256xf32>
    %151 = arith.addf %144, %150 : vector<4x256xf32>
    %c241_i32_115 = arith.constant 241 : i32
    %152 = tpu.dynamic_rotate %111 by %c241_i32_115 dim 1 : vector<4x256xf32>, i32 -> vector<4x256xf32>
    %153 = vector.broadcast %15 : vector<1x256xf32> to vector<4x256xf32>
    %154 = arith.mulf %152, %153 : vector<4x256xf32>
    %c1_116 = arith.constant 1 : index
    %c6_117 = arith.constant 6 : index
    %c0_118 = arith.constant 0 : index
    %c0_119 = arith.constant 0 : index
    %155 = vector.load %arg3[%c1_116, %c6_117, %c0_118, %c0_119] : memref<2x9x4x4xf32, #tpu.memory_space<vmem>>, vector<1x1x4x4xf32>
    %156 = vector.shape_cast %155 : vector<1x1x4x4xf32> to vector<4x4xf32>
    %cst_120 = arith.constant dense<0.000000e+00> : vector<4x256xf32>
    %157 = tpu.matmul %156, %154, %cst_120 {dimension_numbers = #tpu.dot_dimension_numbers<[1], [0], [0], [1], [0, 0, 1, 1], [], []>} : vector<4x4xf32>, vector<4x256xf32>, vector<4x256xf32> -> vector<4x256xf32>
    %158 = arith.addf %151, %157 : vector<4x256xf32>
    %c240_i32_121 = arith.constant 240 : i32
    %159 = tpu.dynamic_rotate %111 by %c240_i32_121 dim 1 : vector<4x256xf32>, i32 -> vector<4x256xf32>
    %160 = vector.broadcast %17 : vector<1x256xf32> to vector<4x256xf32>
    %161 = arith.mulf %159, %160 : vector<4x256xf32>
    %c1_122 = arith.constant 1 : index
    %c7_123 = arith.constant 7 : index
    %c0_124 = arith.constant 0 : index
    %c0_125 = arith.constant 0 : index
    %162 = vector.load %arg3[%c1_122, %c7_123, %c0_124, %c0_125] : memref<2x9x4x4xf32, #tpu.memory_space<vmem>>, vector<1x1x4x4xf32>
    %163 = vector.shape_cast %162 : vector<1x1x4x4xf32> to vector<4x4xf32>
    %cst_126 = arith.constant dense<0.000000e+00> : vector<4x256xf32>
    %164 = tpu.matmul %163, %161, %cst_126 {dimension_numbers = #tpu.dot_dimension_numbers<[1], [0], [0], [1], [0, 0, 1, 1], [], []>} : vector<4x4xf32>, vector<4x256xf32>, vector<4x256xf32> -> vector<4x256xf32>
    %165 = arith.addf %158, %164 : vector<4x256xf32>
    %c239_i32_127 = arith.constant 239 : i32
    %166 = tpu.dynamic_rotate %111 by %c239_i32_127 dim 1 : vector<4x256xf32>, i32 -> vector<4x256xf32>
    %167 = vector.broadcast %19 : vector<1x256xf32> to vector<4x256xf32>
    %168 = arith.mulf %166, %167 : vector<4x256xf32>
    %c1_128 = arith.constant 1 : index
    %c8_129 = arith.constant 8 : index
    %c0_130 = arith.constant 0 : index
    %c0_131 = arith.constant 0 : index
    %169 = vector.load %arg3[%c1_128, %c8_129, %c0_130, %c0_131] : memref<2x9x4x4xf32, #tpu.memory_space<vmem>>, vector<1x1x4x4xf32>
    %170 = vector.shape_cast %169 : vector<1x1x4x4xf32> to vector<4x4xf32>
    %cst_132 = arith.constant dense<0.000000e+00> : vector<4x256xf32>
    %171 = tpu.matmul %170, %168, %cst_132 {dimension_numbers = #tpu.dot_dimension_numbers<[1], [0], [0], [1], [0, 0, 1, 1], [], []>} : vector<4x4xf32>, vector<4x256xf32>, vector<4x256xf32> -> vector<4x256xf32>
    %172 = arith.addf %165, %171 : vector<4x256xf32>
    %c1_133 = arith.constant 1 : index
    %c0_134 = arith.constant 0 : index
    %c0_135 = arith.constant 0 : index
    %173 = vector.load %arg4[%c1_133, %c0_134, %c0_135] : memref<2x4x1xf32, #tpu.memory_space<vmem>>, vector<1x4x1xf32>
    %174 = vector.shape_cast %173 : vector<1x4x1xf32> to vector<4x1xf32>
    %175 = vector.broadcast %174 : vector<4x1xf32> to vector<4x256xf32>
    %176 = arith.addf %172, %175 : vector<4x256xf32>
    %c1_136 = arith.constant 1 : index
    %c0_137 = arith.constant 0 : index
    %c0_138 = arith.constant 0 : index
    %177 = vector.load %arg5[%c1_136, %c0_137, %c0_138] : memref<2x4x1xf32, #tpu.memory_space<vmem>>, vector<1x4x1xf32>
    %178 = vector.shape_cast %177 : vector<1x4x1xf32> to vector<4x1xf32>
    %c1_139 = arith.constant 1 : index
    %c0_140 = arith.constant 0 : index
    %c0_141 = arith.constant 0 : index
    %179 = vector.load %arg6[%c1_139, %c0_140, %c0_141] : memref<2x4x1xf32, #tpu.memory_space<vmem>>, vector<1x4x1xf32>
    %180 = vector.shape_cast %179 : vector<1x4x1xf32> to vector<4x1xf32>
    %cst_142 = arith.constant dense<0.000000e+00> : vector<4xf32>
    %181 = vector.multi_reduction <add>, %176, %cst_142 [1] : vector<4x256xf32> to vector<4xf32>
    %182 = vector.shape_cast %181 : vector<4xf32> to vector<4x1xf32>
    %183 = arith.mulf %176, %176 : vector<4x256xf32>
    %cst_143 = arith.constant dense<0.000000e+00> : vector<4xf32>
    %184 = vector.multi_reduction <add>, %183, %cst_143 [1] : vector<4x256xf32> to vector<4xf32>
    %185 = vector.shape_cast %184 : vector<4xf32> to vector<4x1xf32>
    %cst_144 = arith.constant 3.906250e-03 : f32
    %186 = vector.broadcast %cst_144 : f32 to vector<4x1xf32>
    %187 = arith.mulf %182, %186 : vector<4x1xf32>
    %cst_145 = arith.constant 3.906250e-03 : f32
    %188 = vector.broadcast %cst_145 : f32 to vector<4x1xf32>
    %189 = arith.mulf %185, %188 : vector<4x1xf32>
    %190 = arith.mulf %187, %187 : vector<4x1xf32>
    %191 = arith.subf %189, %190 : vector<4x1xf32>
    %cst_146 = arith.constant 9.99999974E-6 : f32
    %192 = vector.broadcast %cst_146 : f32 to vector<4x1xf32>
    %193 = arith.addf %191, %192 : vector<4x1xf32>
    %194 = math.rsqrt %193 : vector<4x1xf32>
    %195 = vector.broadcast %187 : vector<4x1xf32> to vector<4x256xf32>
    %196 = arith.subf %176, %195 : vector<4x256xf32>
    %197 = arith.mulf %194, %178 : vector<4x1xf32>
    %198 = vector.broadcast %197 : vector<4x1xf32> to vector<4x256xf32>
    %199 = arith.mulf %196, %198 : vector<4x256xf32>
    %200 = vector.broadcast %180 : vector<4x1xf32> to vector<4x256xf32>
    %201 = arith.addf %199, %200 : vector<4x256xf32>
    %cst_147 = arith.constant 0.000000e+00 : f32
    %202 = vector.broadcast %cst_147 : f32 to vector<4x256xf32>
    %203 = arith.maximumf %201, %202 : vector<4x256xf32>
    %c0_148 = arith.constant 0 : index
    %c0_149 = arith.constant 0 : index
    %204 = vector.load %arg7[%c0_148, %c0_149] : memref<256x128xf32, #tpu.memory_space<vmem>>, vector<256x128xf32>
    %cst_150 = arith.constant dense<0.000000e+00> : vector<4x128xf32>
    %205 = tpu.matmul %203, %204, %cst_150 {dimension_numbers = #tpu.dot_dimension_numbers<[1], [0], [0], [1], [0, 0, 1, 1], [], []>} : vector<4x256xf32>, vector<256x128xf32>, vector<4x128xf32> -> vector<4x128xf32>
    %c0_151 = arith.constant 0 : index
    %c0_152 = arith.constant 0 : index
    %206 = vector.load %arg8[%c0_151, %c0_152] : memref<1x128xf32, #tpu.memory_space<vmem>>, vector<1x128xf32>
    %207 = vector.broadcast %206 : vector<1x128xf32> to vector<4x128xf32>
    %208 = arith.addf %205, %207 : vector<4x128xf32>
    %c0_153 = arith.constant 0 : index
    %c0_154 = arith.constant 0 : index
    %209 = vector.load %arg9[%c0_153, %c0_154] : memref<4x1xf32, #tpu.memory_space<vmem>>, vector<4x1xf32>
    %c0_155 = arith.constant 0 : index
    %c0_156 = arith.constant 0 : index
    %210 = vector.load %arg10[%c0_155, %c0_156] : memref<4x1xf32, #tpu.memory_space<vmem>>, vector<4x1xf32>
    %cst_157 = arith.constant dense<0.000000e+00> : vector<4xf32>
    %211 = vector.multi_reduction <add>, %208, %cst_157 [1] : vector<4x128xf32> to vector<4xf32>
    %212 = vector.shape_cast %211 : vector<4xf32> to vector<4x1xf32>
    %213 = arith.mulf %208, %208 : vector<4x128xf32>
    %cst_158 = arith.constant dense<0.000000e+00> : vector<4xf32>
    %214 = vector.multi_reduction <add>, %213, %cst_158 [1] : vector<4x128xf32> to vector<4xf32>
    %215 = vector.shape_cast %214 : vector<4xf32> to vector<4x1xf32>
    %cst_159 = arith.constant 7.812500e-03 : f32
    %216 = vector.broadcast %cst_159 : f32 to vector<4x1xf32>
    %217 = arith.mulf %212, %216 : vector<4x1xf32>
    %cst_160 = arith.constant 7.812500e-03 : f32
    %218 = vector.broadcast %cst_160 : f32 to vector<4x1xf32>
    %219 = arith.mulf %215, %218 : vector<4x1xf32>
    %220 = arith.mulf %217, %217 : vector<4x1xf32>
    %221 = arith.subf %219, %220 : vector<4x1xf32>
    %cst_161 = arith.constant 9.99999974E-6 : f32
    %222 = vector.broadcast %cst_161 : f32 to vector<4x1xf32>
    %223 = arith.addf %221, %222 : vector<4x1xf32>
    %224 = math.rsqrt %223 : vector<4x1xf32>
    %225 = vector.broadcast %217 : vector<4x1xf32> to vector<4x128xf32>
    %226 = arith.subf %208, %225 : vector<4x128xf32>
    %227 = arith.mulf %224, %209 : vector<4x1xf32>
    %228 = vector.broadcast %227 : vector<4x1xf32> to vector<4x128xf32>
    %229 = arith.mulf %226, %228 : vector<4x128xf32>
    %230 = vector.broadcast %210 : vector<4x1xf32> to vector<4x128xf32>
    %231 = arith.addf %229, %230 : vector<4x128xf32>
    %cst_162 = arith.constant 0.000000e+00 : f32
    %232 = vector.broadcast %cst_162 : f32 to vector<4x128xf32>
    %233 = arith.maximumf %231, %232 : vector<4x128xf32>
    %c0_163 = arith.constant 0 : index
    %c0_164 = arith.constant 0 : index
    %234 = vector.load %arg11[%c0_163, %c0_164] : memref<128x256xf32, #tpu.memory_space<vmem>>, vector<128x256xf32>
    %cst_165 = arith.constant dense<0.000000e+00> : vector<4x256xf32>
    %235 = tpu.matmul %233, %234, %cst_165 {dimension_numbers = #tpu.dot_dimension_numbers<[1], [0], [0], [1], [0, 0, 1, 1], [], []>} : vector<4x128xf32>, vector<128x256xf32>, vector<4x256xf32> -> vector<4x256xf32>
    %c0_166 = arith.constant 0 : index
    %c0_167 = arith.constant 0 : index
    %236 = vector.load %arg12[%c0_166, %c0_167] : memref<1x256xf32, #tpu.memory_space<vmem>>, vector<1x256xf32>
    %237 = vector.broadcast %236 : vector<1x256xf32> to vector<4x256xf32>
    %238 = arith.addf %235, %237 : vector<4x256xf32>
    %c0_168 = arith.constant 0 : index
    %c0_169 = arith.constant 0 : index
    %239 = vector.load %arg13[%c0_168, %c0_169] : memref<4x1xf32, #tpu.memory_space<vmem>>, vector<4x1xf32>
    %c0_170 = arith.constant 0 : index
    %c0_171 = arith.constant 0 : index
    %240 = vector.load %arg14[%c0_170, %c0_171] : memref<4x1xf32, #tpu.memory_space<vmem>>, vector<4x1xf32>
    %cst_172 = arith.constant dense<0.000000e+00> : vector<4xf32>
    %241 = vector.multi_reduction <add>, %238, %cst_172 [1] : vector<4x256xf32> to vector<4xf32>
    %242 = vector.shape_cast %241 : vector<4xf32> to vector<4x1xf32>
    %243 = arith.mulf %238, %238 : vector<4x256xf32>
    %cst_173 = arith.constant dense<0.000000e+00> : vector<4xf32>
    %244 = vector.multi_reduction <add>, %243, %cst_173 [1] : vector<4x256xf32> to vector<4xf32>
    %245 = vector.shape_cast %244 : vector<4xf32> to vector<4x1xf32>
    %cst_174 = arith.constant 3.906250e-03 : f32
    %246 = vector.broadcast %cst_174 : f32 to vector<4x1xf32>
    %247 = arith.mulf %242, %246 : vector<4x1xf32>
    %cst_175 = arith.constant 3.906250e-03 : f32
    %248 = vector.broadcast %cst_175 : f32 to vector<4x1xf32>
    %249 = arith.mulf %245, %248 : vector<4x1xf32>
    %250 = arith.mulf %247, %247 : vector<4x1xf32>
    %251 = arith.subf %249, %250 : vector<4x1xf32>
    %cst_176 = arith.constant 9.99999974E-6 : f32
    %252 = vector.broadcast %cst_176 : f32 to vector<4x1xf32>
    %253 = arith.addf %251, %252 : vector<4x1xf32>
    %254 = math.rsqrt %253 : vector<4x1xf32>
    %255 = vector.broadcast %247 : vector<4x1xf32> to vector<4x256xf32>
    %256 = arith.subf %238, %255 : vector<4x256xf32>
    %257 = arith.mulf %254, %239 : vector<4x1xf32>
    %258 = vector.broadcast %257 : vector<4x1xf32> to vector<4x256xf32>
    %259 = arith.mulf %256, %258 : vector<4x256xf32>
    %260 = vector.broadcast %240 : vector<4x1xf32> to vector<4x256xf32>
    %261 = arith.addf %259, %260 : vector<4x256xf32>
    %cst_177 = arith.constant 0.000000e+00 : f32
    %262 = vector.broadcast %cst_177 : f32 to vector<4x256xf32>
    %263 = arith.maximumf %261, %262 : vector<4x256xf32>
    %264 = arith.addf %203, %263 : vector<4x256xf32>
    %c0_178 = arith.constant 0 : index
    %c0_179 = arith.constant 0 : index
    %c0_180 = arith.constant 0 : index
    %265 = vector.load %arg15[%c0_178, %c0_179, %c0_180] : memref<1x4x256xf32, #tpu.memory_space<vmem>>, vector<1x4x256xf32>
    %266 = vector.shape_cast %265 : vector<1x4x256xf32> to vector<4x256xf32>
    %267 = vector.shape_cast %264 : vector<4x256xf32> to vector<1x4x256xf32>
    tpu.vector_store %arg15[%c0_178, %c0_179, %c0_180], %267 {strides = array<i32>} : memref<1x4x256xf32, #tpu.memory_space<vmem>>, vector<1x4x256xf32>,
    return
  }
  func.func @transform_0(%arg0: i32) -> (i32, i32, i32) {
    %c0_i32 = arith.constant 0 : i32
    %c0_i32_0 = arith.constant 0 : i32
    %c0_i32_1 = arith.constant 0 : i32
    return %arg0, %c0_i32, %c0_i32_0 : i32, i32, i32
  }
  func.func @transform_1(%arg0: i32) -> (i32, i32, i32) {
    %c0_i32 = arith.constant 0 : i32
    %c0_i32_0 = arith.constant 0 : i32
    %c0_i32_1 = arith.constant 0 : i32
    %c0_i32_2 = arith.constant 0 : i32
    return %c0_i32, %c0_i32_0, %c0_i32_1 : i32, i32, i32
  }
  func.func @transform_2(%arg0: i32) -> (i32, i32, i32, i32) {
    %c0_i32 = arith.constant 0 : i32
    %c0_i32_0 = arith.constant 0 : i32
    %c0_i32_1 = arith.constant 0 : i32
    %c0_i32_2 = arith.constant 0 : i32
    %c0_i32_3 = arith.constant 0 : i32
    return %c0_i32, %c0_i32_0, %c0_i32_1, %c0_i32_2 : i32, i32, i32, i32
  }
  func.func @transform_3(%arg0: i32) -> (i32, i32, i32) {
    %c0_i32 = arith.constant 0 : i32
    %c0_i32_0 = arith.constant 0 : i32
    %c0_i32_1 = arith.constant 0 : i32
    %c0_i32_2 = arith.constant 0 : i32
    return %c0_i32, %c0_i32_0, %c0_i32_1 : i32, i32, i32
  }
  func.func @transform_4(%arg0: i32) -> (i32, i32, i32) {
    %c0_i32 = arith.constant 0 : i32
    %c0_i32_0 = arith.constant 0 : i32
    %c0_i32_1 = arith.constant 0 : i32
    %c0_i32_2 = arith.constant 0 : i32
    return %c0_i32, %c0_i32_0, %c0_i32_1 : i32, i32, i32
  }
  func.func @transform_5(%arg0: i32) -> (i32, i32, i32) {
    %c0_i32 = arith.constant 0 : i32
    %c0_i32_0 = arith.constant 0 : i32
    %c0_i32_1 = arith.constant 0 : i32
    %c0_i32_2 = arith.constant 0 : i32
    return %c0_i32, %c0_i32_0, %c0_i32_1 : i32, i32, i32
  }
  func.func @transform_6(%arg0: i32) -> (i32, i32) {
    %c0_i32 = arith.constant 0 : i32
    %c0_i32_0 = arith.constant 0 : i32
    %c0_i32_1 = arith.constant 0 : i32
    return %c0_i32, %c0_i32_0 : i32, i32
  }
  func.func @transform_7(%arg0: i32) -> (i32, i32) {
    %c0_i32 = arith.constant 0 : i32
    %c0_i32_0 = arith.constant 0 : i32
    %c0_i32_1 = arith.constant 0 : i32
    return %c0_i32, %c0_i32_0 : i32, i32
  }
  func.func @transform_8(%arg0: i32) -> (i32, i32) {
    %c0_i32 = arith.constant 0 : i32
    %c0_i32_0 = arith.constant 0 : i32
    %c0_i32_1 = arith.constant 0 : i32
    return %c0_i32, %c0_i32_0 : i32, i32
  }
  func.func @transform_9(%arg0: i32) -> (i32, i32) {
    %c0_i32 = arith.constant 0 : i32
    %c0_i32_0 = arith.constant 0 : i32
    %c0_i32_1 = arith.constant 0 : i32
    return %c0_i32, %c0_i32_0 : i32, i32
  }
  func.func @transform_10(%arg0: i32) -> (i32, i32) {
    %c0_i32 = arith.constant 0 : i32
    %c0_i32_0 = arith.constant 0 : i32
    %c0_i32_1 = arith.constant 0 : i32
    return %c0_i32, %c0_i32_0 : i32, i32
  }
  func.func @transform_11(%arg0: i32) -> (i32, i32) {
    %c0_i32 = arith.constant 0 : i32
    %c0_i32_0 = arith.constant 0 : i32
    %c0_i32_1 = arith.constant 0 : i32
    return %c0_i32, %c0_i32_0 : i32, i32
  }
  func.func @transform_12(%arg0: i32) -> (i32, i32) {
    %c0_i32 = arith.constant 0 : i32
    %c0_i32_0 = arith.constant 0 : i32
    %c0_i32_1 = arith.constant 0 : i32
    return %c0_i32, %c0_i32_0 : i32, i32
  }
  func.func @transform_13(%arg0: i32) -> (i32, i32) {
    %c0_i32 = arith.constant 0 : i32
    %c0_i32_0 = arith.constant 0 : i32
    %c0_i32_1 = arith.constant 0 : i32
    return %c0_i32, %c0_i32_0 : i32, i32
  }
  func.func @transform_14(%arg0: i32) -> (i32, i32, i32) {
    %c0_i32 = arith.constant 0 : i32
    %c0_i32_0 = arith.constant 0 : i32
    %c0_i32_1 = arith.constant 0 : i32
    return %arg0, %c0_i32, %c0_i32_0 : i32, i32, i32
  }
}

</mosaic_0001>

<bundles_post_ra>
// kernel: tpu_custom_call.1
= control target key start
LH: loop header
LB: loop body
LE: loop exit
PB: predicated region body
PF: predicated region fallthrough
CT: control target
= control target key end

     0   :  { %s3162_s0 = inlined_call_operand.vmem [shape: f32[2,4,256], index: 0, kind: input, shape index: {}]   ;;  %s3163_s1 = inlined_call_operand.vmem [shape: f32[9,1,256], index: 1, kind: input, shape index: {}]   ;;  %s3164_s2 = inlined_call_operand.vmem [shape: f32[2,9,4,4], index: 2, kind: input, shape index: {}]   ;;  %s3165_s3 = inlined_call_operand.vmem [shape: f32[2,4,1], index: 3, kind: input, shape index: {}]   ;;  %s3166_s4 = inlined_call_operand.vmem [shape: f32[2,4,1], index: 4, kind: input, shape index: {}]   ;;  %s3167_s5 = inlined_call_operand.vmem [shape: f32[2,4,1], index: 5, kind: input, shape index: {}]   ;;  %s3168_s6 = inlined_call_operand.hbm [shape: f32[256,128], index: 6, kind: input, shape index: {}]   ;;  %s3169_s7 = inlined_call_operand.vmem [shape: f32[1,128], index: 7, kind: input, shape index: {}]   ;;  %s3170_s8 = inlined_call_operand.vmem [shape: f32[4,1], index: 8, kind: input, shape index: {}]   ;;  %s3171_s9 = inlined_call_operand.vmem [shape: f32[4,1], index: 9, kind: input, shape index: {}]   ;;  %s3172_s10 = inlined_call_operand.hbm [shape: f32[128,256], index: 10, kind: input, shape index: {}]   ;;  %s3173_s11 = inlined_call_operand.vmem [shape: f32[1,256], index: 11, kind: input, shape index: {}]   ;;  %s3174_s12 = inlined_call_operand.vmem [shape: f32[4,1], index: 12, kind: input, shape index: {}]   ;;  %s3175_s13 = inlined_call_operand.vmem [shape: f32[4,1], index: 13, kind: input, shape index: {}]   ;;  %s3176_s14 = inlined_call_operand.hbm [shape: f32[2,4,256], index: 14, kind: output, shape index: {}]  }
   0x1   :  { %3184 = sst [smem:[#allocation16_spill]] %s3168_s6 }
   0x2   :  { %19 = vsyncpa [#allocation3], 0 }
   0x3   :  { %20 = vsyncpa [#allocation6], 0 }
   0x4   :  { %21 = vsyncpa [#allocation4], 0 }
   0x5   :  { %23 = vsyncpa [#allocation4 + $0x1], 0  ;;  %s2584_s29 = smov 0   ;;  %s2586_s30 = smov 0  }
   0x6   :  { %s2588_s15 = smov 0   ;;  %s2590_s16 = smov 0  }
   0x7 LB: > { %3185 = sst [smem:[#allocation11_spill]] %s2480_s29  ;;  %s2605_s17 = sadd.s32 4294967295, %s2492_s16   ;;  %s2492_s16 = sphi %s2590_s16, %s3197_s16   ;;  %s2488_s15 = sphi %s2588_s15, %s3199_s15   ;;  %s2484_s30 = sphi %s2586_s30, %s3201_s30   ;;  %s2480_s29 = sphi %s2584_s29, %s3200_s29  }
   0x8   : > { %3186 = sst [smem:[#allocation12_spill]] %s2488_s15  ;;  %s2159_s18 = sadd.s32 4294967294, %s2492_s16  }
   0x9   : > { %s2609_s19 = sadd.s32 1, %s2492_s16   ;;  %s335_s20 = sadd.s32 1, %s2488_s15 }
   0xa   : > { %3187 = sst [smem:[#allocation13_spill]] %s2609_s19  ;;  %s332_s21 = ssub.s32 %s2492_s16, %s2609_s19 }
   0xb   : > { %p345_p0 = scmp.ne.s32.totalorder %s2488_s15, %s2484_s30  ;;  %p333_p1 = scmp.eq.s32.totalorder %s332_s21, 0 }
   0xc   : > { %p346_p2 = scmp.eq.s32.totalorder %s2605_s17, 1  ;;  %p351_p3 = scmp.ne.s32.totalorder %s2484_s30, %s2480_s29 }
   0xd   : > { %p352_p4 = scmp.eq.s32.totalorder %s2159_s18, 1  ;;  %p2160_p7 = scmp.ge.s32.totalorder %s2492_s16, 1 }
   0xe   : > { %s2620_s22 = scalar_select %p333_p1, %s2488_s15, %s335_s20  }
   0xf   : > { %p2622_p5 = por %p346_p2, %p345_p0  ;;  %p2626_p6 = por %p352_p4, %p351_p3 }
  0x10   : > { %3188 = sst [smem:[#allocation14_spill]] %s2620_s22  ;;  %p359_p8 = scmp.lt.s32.totalorder %s2492_s16, 3 }
  0x11   : > { %s3190_s24 = scalar_select %p2626_p6, 1, 0 }
  0x12   : > { %p2298_p9 = scmp.eq.s32.totalorder %s2605_s17, 0  ;;  %p2633_p10 = pnand %p2160_p7, %p359_p8 }
  0x13   : > { %3191 = sst [smem:[#allocation15_spill]] %s3190_s24  ;;  %s2494_s18 = smov [#allocation2]  }
  0x14   : > { %s3193_s6 = sld [smem:[#allocation16_spill]]  ;;  %p2287_p11 = pneg %p2633_p10 }
  0x15   : > { %s387_s20 = sshll.u32 %s2494_s18, 4  ;;  %s408_s15 = sshll.u32 %s3172_s10, 4  ;;  %s388_s20 = int_to_ptr.vmem [resolvable:$true] %s387_s20  ;;  %s409_s15 = int_to_ptr.hbm [resolvable:$true] %s408_s15 }
  0x16   : > { %p2288_p12 = pnand %p2298_p9, %p2287_p11  ;;  %s2495_s19 = smov 128  }
  0x17   : > { %s2496_s24 = smov 8   ;;  %s2497_s29 = smov [#allocation5]  }
  0x18   : > { %s410_s26 = sshll.u32 %s2497_s29, 4  ;;  %s2498_s27 = smov 256   ;;  %s411_s26 = int_to_ptr.vmem [resolvable:$true] %s410_s26 }
  0x19   : > { %443 = sbr.rel (%p2633_p10) target bundleno = 2010 (0x7da), region = 76 }
  0x1a   : > { %s385_s28 = sshll.u32 %s3193_s6, 4  ;;  %s2499_s6 = smov 16   ;;  %s386_s28 = int_to_ptr.hbm [resolvable:$true] %s385_s28 }
  0x1b   : > { %2290 = dma.hbm_to_vmem [thread:$0]  (!%p2288_p12), %s386_s28, 4096, %s388_s20, [#allocation3], %s2495_s19, %s2495_s19, %s2496_s24  }
  0x1c   : > { %2293 = dma.hbm_to_vmem [thread:$0]  (!%p2288_p12), %s409_s15, 4096, %s411_s26, [#allocation6], %s2498_s27, %s2498_s27, %s2499_s6  }
  0x1e   : > { %2467 = dma.done.wait (%p2298_p9), [#allocation3], 4096  }
  0x1f   : > { %2469 = vsyncadd (%p2298_p9), [#allocation3], 4294963200 }
  0x20   : > { %2471 = dma.done.wait (%p2298_p9), [#allocation6], 4096  }
  0x21   : > { %2473 = vsyncadd (%p2298_p9), [#allocation6], 4294963200  ;;  %p495_p13 = scmp.lt.s32.totalorder %s2605_s17, 1  ;;  %s2500_s24 = smov 17   ;;  %v2666_v3 = vld [vmem:[%s3163_s1 + $0x8] sm:$0x3]  ;;  %v528_v25 = vlaneseq }
  0x22   : > { %s2501_s18 = smov 16   ;;  %v808_v6 = vperm.slane %v2666_v3, 1  ;;  %v807_v7 = vperm.slane %v2666_v3, 0  ;;  %vm566_vm0 = vcmask 1043456   ;;  %s2502_s20 = smov 15   ;;  %vm562_vm2 = vcmask 31744  }
  0x23   : > { %s496_s29 = scalar_select %p495_p13, %s2605_s17, 1  ;;  %v2694_v27 = vand.u32 127, %v528_v25  ;;  %v2699_v29 = vld [vmem:[%s3163_s1] sm:$0x3]  ;;  %v2718_v39 = vld [vmem:[%s3163_s1 + $0x2] sm:$0x3] }
  0x24   : > { %v811_v8 = vrot.slane %v808_v6, 4  ;;  %s3182_s21 = smov 1   ;;  %s2504_s26 = smov 127   ;;  %v534_v30 = vperm.slane %v2699_v29, 0  ;;  %v535_v31 = vperm.slane %v2699_v29, 1  ;;  %v554_v42 = vperm.slane %v2718_v39, 0 }
  0x25   : > { %s2275_s6 = sshll.u32 %s496_s29, 3  ;;  %s2505_s27 = smov 113   ;;  %vm530_vm1 = vcmp.lt.s32.totalorder %v2694_v27, 17  ;;  %v540_v38 = vld [vmem:[%s3164_s2] sm:$0xf]  ;;  %vm671_vm3 = vcmp.lt.s32.totalorder %v2694_v27, 15 }
  0x26   : > { %s499_s22 = scalar_lea.vmem %s3162_s0, %s2275_s6  ;;  %v812_v11 = vsel %vm566_vm0, %v807_v7, %v811_v8  ;;  %s2506_s29 = smov 112   ;;  %v2723_v40 = vld [vmem:[%s3163_s1 + $0x4] sm:$0x3]  ;;  %vm550_vm4 = vcmp.lt.s32.totalorder %v2694_v27, 16  ;;  %v555_v43 = vperm.slane %v2718_v39, 1  ;;  %vm743_vm5 = vcmp.lt.s32.totalorder %v2694_v27, 1 }
  0x27   : > { %v500_v0 = vld [vmem:[%s499_s22] sm:$0xff]  ;;  %s2507_s6 = smov 111   ;;  %v675_v44 = vperm.slane %v2723_v40, 0  ;;  %v676_v45 = vperm.slane %v2723_v40, 1  ;;  %vm879_vm6 = vcmp.lt.s32.totalorder %v2694_v27, 127  ;;  %vm951_vm7 = vcmp.lt.s32.totalorder %v2694_v27, 113 }
  0x28   : > { %519 = vst [vmem:[#allocation1] ss:$2 sm:$0xff] %v500_v0  ;;  %v814_v12 = vmul.f32 %v812_v11, %v500_v0  ;;  %v2178_v53 = vld [vmem:[%s3164_s2 + $0x4] sm:$0xf]  ;;  %vm1023_vm8 = vcmp.lt.s32.totalorder %v2694_v27, 112  ;;  %vm1095_vm9 = vcmp.lt.s32.totalorder %v2694_v27, 111 }
  0x29   : > { %v2757_v56 = vld [vmem:[%s3163_s1 + $0x6] sm:$0x3]  ;;  %s3194_s25 = smov 1  }
  0x2a   : > { %v747_v57 = vperm.slane %v2757_v56, 0  ;;  %v748_v58 = vperm.slane %v2757_v56, 1 }
  0x2f   : > { %v520_v1 = vld.sshfl [vmem:[#allocation1] sm:$0xff pattern:$0x75316420]  ;;  %v521_v2 = vld.sshfl [vmem:[#allocation1 + $0x8] sm:$0xff pattern:$0x75316420] }
  0x30   : > { %524 = vrot.lane.b32.xlu0 %v520_v1, %s2500_s24  ;;  %541 = vst [vmem:[#allocation1] ss:$2 sm:$0xff] %v500_v0  ;;  %v2187_v1 = vld [vmem:[%s3164_s2 + $0x8] sm:$0xf] }
  0x37   : > { %v542_v4 = vld.sshfl [vmem:[#allocation1] sm:$0xff pattern:$0x75316420]  ;;  %v543_v5 = vld.sshfl [vmem:[#allocation1 + $0x8] sm:$0xff pattern:$0x75316420] }
  0x38   : > { %546 = vrot.lane.b32.xlu1 %v542_v4, %s2501_s18  ;;  %526 = vrot.lane.b32.xlu0 %v521_v2, %s2500_s24  ;;  %662 = vst [vmem:[#allocation1] ss:$2 sm:$0xff] %v500_v0  ;;  %v2192_v2 = vld [vmem:[%s3164_s2 + $0xc] sm:$0xf]  ;;  %v2197_v4 = vld [vmem:[%s3164_s2 + $0x10] sm:$0xf] }
  0x3f   : > { %v663_v9 = vld.sshfl [vmem:[#allocation1] sm:$0xff pattern:$0x75316420]  ;;  %v664_v10 = vld.sshfl [vmem:[#allocation1 + $0x8] sm:$0xff pattern:$0x75316420] }
  0x40   : > { %548 = vrot.lane.b32.xlu1 %v543_v5, %s2501_s18  ;;  %734 = vst [vmem:[#allocation1] ss:$2 sm:$0xff] %v500_v0  ;;  %667 = vrot.lane.b32.xlu2 %v663_v9, %s2502_s20  ;;  %v2798_v5 = vld [vmem:[%s3163_s1 + $0xa] sm:$0x3]  ;;  %v1158_v9 = vld [vmem:[%s3165_s3] sm:$0xf] }
  0x41   : > { %v884_v11 = vperm.slane %v2798_v5, 1 }
  0x47   : > { %v736_v13 = vld.sshfl [vmem:[#allocation1 + $0x8] sm:$0xff pattern:$0x75316420]  ;;  %v735_v14 = vld.sshfl [vmem:[#allocation1] sm:$0xff pattern:$0x75316420] }
  0x48   : > { %741 = vrot.lane.b32.xlu1 %v736_v13, %s3182_s21  ;;  %739 = vrot.lane.b32.xlu0 %v735_v14, %s3182_s21  ;;  %818 = vst [vmem:[#allocation1] ss:$2 sm:$0xff] %v814_v12  ;;  %v2508_v12 = vmov 0   ;;  %s492_s21 = sand.u32 1, %s2484_s30  }
  0x49   : > { %669 = vrot.lane.b32.xlu2 %v664_v10, %s2502_s20  ;;  %v883_v10 = vperm.slane %v2798_v5, 0  ;;  %2350 = vset.pattern.permute.xlu1 %v2508_v12  ;;  %s2167_s22 = sshll.u32 %s492_s21, 3 }
  0x4a   : > { %2351 = vset.pattern.permute.xlu0 %v2508_v12  ;;  %2352 = vset.pattern.permute.xlu2 %v2508_v12 }
  0x4f   : > { %v2682_v15 = vld.sshfl [vmem:[#allocation1] sm:$0xff pattern:$0x75316420]  ;;  %v2684_v16 = vld.sshfl [vmem:[#allocation1 + $0x8] sm:$0xff pattern:$0x75316420] }
  0x50   : > { %870 = vst [vmem:[#allocation1] ss:$2 sm:$0xff] %v500_v0 }
  0x57   : > { %v872_v17 = vld.sshfl [vmem:[#allocation1 + $0x8] sm:$0xff pattern:$0x75316420]  ;;  %v871_v18 = vld.sshfl [vmem:[#allocation1] sm:$0xff pattern:$0x75316420] }
  0x58   : > { %877 = vrot.lane.b32.xlu0 %v872_v17, %s2504_s26  ;;  %942 = vst [vmem:[#allocation1] ss:$2 sm:$0xff] %v500_v0  ;;  %875 = vrot.lane.b32.xlu2 %v871_v18, %s2504_s26  ;;  %v2202_v18 = vld [vmem:[%s3164_s2 + $0x14] sm:$0xf] }
  0x5f   : > { %v944_v19 = vld.sshfl [vmem:[#allocation1 + $0x8] sm:$0xff pattern:$0x75316420]  ;;  %v943_v20 = vld.sshfl [vmem:[#allocation1] sm:$0xff pattern:$0x75316420] }
  0x60   : > { %947 = vrot.lane.b32.xlu1 %v943_v20, %s2505_s27  ;;  %1014 = vst [vmem:[#allocation1] ss:$2 sm:$0xff] %v500_v0  ;;  %949 = vrot.lane.b32.xlu2 %v944_v19, %s2505_s27  ;;  %v2822_v19 = vld [vmem:[%s3163_s1 + $0xc] sm:$0x3] }
  0x67   : > { %v1016_v21 = vld.sshfl [vmem:[#allocation1 + $0x8] sm:$0xff pattern:$0x75316420]  ;;  %v1015_v22 = vld.sshfl [vmem:[#allocation1] sm:$0xff pattern:$0x75316420] }
  0x68   : > { %1021 = vrot.lane.b32.xlu1 %v1016_v21, %s2506_s29  ;;  %1019 = vrot.lane.b32.xlu0 %v1015_v22, %s2506_s29  ;;  %1086 = vst [vmem:[#allocation1] ss:$2 sm:$0xff] %v500_v0  ;;  %v955_v21 = vperm.slane %v2822_v19, 0  ;;  %v956_v22 = vperm.slane %v2822_v19, 1 }
  0x6f   : > { %v1088_v23 = vld.sshfl [vmem:[#allocation1 + $0x8] sm:$0xff pattern:$0x75316420]  ;;  %v1087_v24 = vld.sshfl [vmem:[#allocation1] sm:$0xff pattern:$0x75316420] }
  0x70   : > { %1093 = vrot.lane.b32.xlu0 %v1088_v23, %s2507_s6  ;;  %1091 = vrot.lane.b32.xlu2 %v1087_v24, %s2507_s6 }
  0x71   : > { %1161 = vperm.xlu1 %2350, %v1158_v9  }
  0x9a   : > { %v668_v28 = vpop.permute.xlu2 %667 }
  0xa2   : > { %v525_v26 = vpop.permute.xlu0 %524 }
  0xa3   : > { %v670_v41 = vpop.permute.xlu2 %669 }
  0xa4   : > { %v672_v46 = vsel %vm671_vm3, %v668_v28, %v670_v41  ;;  %v673_v47 = vsel %vm671_vm3, %v670_v41, %v668_v28 }
  0xa5   : > { %v679_v54 = vmul.f32 %v675_v44, %v673_v47  ;;  %v680_v55 = vmul.f32 %v676_v45, %v672_v46 }
  0xaa   : > { %v547_v32 = vpop.permute.xlu1 %546  ;;  %v527_v33 = vpop.permute.xlu0 %526 }
  0xab   : > { %v531_v34 = vsel %vm530_vm1, %v525_v26, %v527_v33  ;;  %v532_v35 = vsel %vm530_vm1, %v527_v33, %v525_v26  ;;  %v2845_v33 = vld [vmem:[%s3163_s1 + $0xe] sm:$0x3] }
  0xac   : > { %v538_v36 = vmul.f32 %v534_v30, %v532_v35  ;;  %v539_v37 = vmul.f32 %v535_v31, %v531_v34  ;;  %v1027_v34 = vperm.slane %v2845_v33, 0  ;;  %v1028_v35 = vperm.slane %v2845_v33, 1 }
  0xae   : > { %2183 = vmatpush.msk.msra.mxu2 %vm566_vm0, %v538_v36  ;;  %2185 = vmatpush.msk.msra.mxu3 %vm566_vm0, %v539_v37 }
  0xaf   : > { %2184 = vmatmul.msk.f32.vlgmr.msra.gmra.mxu2 %vm562_vm2, %v540_v38  ;;  %2186 = vmatmul.msk.f32.vlgmr.msra.gmra.mxu3 %vm562_vm2, %v540_v38 }
  0xb2   : > { %v549_v48 = vpop.permute.xlu1 %548  ;;  %v876_v8 = vpop.permute.xlu2 %875 }
  0xb3   : > { %v551_v49 = vsel %vm550_vm4, %v547_v32, %v549_v48  ;;  %v552_v50 = vsel %vm550_vm4, %v549_v48, %v547_v32  ;;  %v2207_v32 = vld [vmem:[%s3164_s2 + $0x18] sm:$0xf]  ;;  %v2212_v48 = vld [vmem:[%s3164_s2 + $0x1c] sm:$0xf] }
  0xb4   : > { %v558_v51 = vmul.f32 %v554_v42, %v552_v50  ;;  %v559_v52 = vmul.f32 %v555_v43, %v551_v49  ;;  %v2868_v49 = vld [vmem:[%s3163_s1 + $0x10] sm:$0x3] }
  0xb5   : > { %v1099_v50 = vperm.slane %v2868_v49, 0 }
  0xb6   : > { %2179 = vmatpush.msk.msra.mxu0 %vm566_vm0, %v558_v51  ;;  %2181 = vmatpush.msk.msra.mxu1 %vm566_vm0, %v559_v52  ;;  %v1100_v51 = vperm.slane %v2868_v49, 1 }
  0xb7   : > { %2180 = vmatmul.msk.f32.vlgmr.msra.gmra.mxu0 %vm562_vm2, %v2178_v53  ;;  %2182 = vmatmul.msk.f32.vlgmr.msra.gmra.mxu1 %vm562_vm2, %v2178_v53 }
  0xb8   : > { %2188 = vmatpush.msk.msrb.mxu0 %vm566_vm0, %v679_v54  ;;  %2190 = vmatpush.msk.msrb.mxu1 %vm566_vm0, %v680_v55 }
  0xba   : > { %2198 = vmatpush.msk.msra.mxu0 %vm566_vm0, %v2682_v15  ;;  %2200 = vmatpush.msk.msra.mxu1 %vm566_vm0, %v2684_v16  ;;  %v742_v59 = vpop.permute.xlu1 %741  ;;  %v740_v60 = vpop.permute.xlu0 %739 }
  0xbb   : > { %v744_v61 = vsel %vm743_vm5, %v740_v60, %v742_v59  ;;  %v745_v62 = vsel %vm743_vm5, %v742_v59, %v740_v60  ;;  %v950_v20 = vpop.permute.xlu2 %949 }
  0xbc   : > { %v751_v63 = vmul.f32 %v747_v57, %v745_v62  ;;  %v752_v0 = vmul.f32 %v748_v58, %v744_v61  ;;  %v2217_v61 = vld [vmem:[%s3164_s2 + $0x20] sm:$0xf] }
  0xbe   : > { %2193 = vmatpush.msk.msrb.mxu2 %vm566_vm0, %v751_v63  ;;  %2195 = vmatpush.msk.msrb.mxu3 %vm566_vm0, %v752_v0 }
  0xbf   : > { %2189 = vmatmul.msk.f32.vlgmr.msrb.gmra.mxu0 %vm562_vm2, %v2187_v1  ;;  %2191 = vmatmul.msk.f32.vlgmr.msrb.gmra.mxu1 %vm562_vm2, %v2187_v1 }
  0xc0   : > { %2194 = vmatmul.msk.f32.vlgmr.msrb.gmra.mxu2 %vm562_vm2, %v2192_v2  ;;  %2196 = vmatmul.msk.f32.vlgmr.msrb.gmra.mxu3 %vm562_vm2, %v2192_v2 }
  0xc7   : > { %2199 = vmatmul.msk.f32.vlgmr.msra.gmra.mxu0 %vm562_vm2, %v2197_v4  ;;  %2201 = vmatmul.msk.f32.vlgmr.msra.gmra.mxu1 %vm562_vm2, %v2197_v4 }
  0xca   : > { %v878_v13 = vpop.permute.xlu0 %877  ;;  %v1092_v52 = vpop.permute.xlu2 %1091 }
  0xcb   : > { %v880_v14 = vsel %vm879_vm6, %v876_v8, %v878_v13  ;;  %v881_v15 = vsel %vm879_vm6, %v878_v13, %v876_v8 }
  0xcc   : > { %v887_v16 = vmul.f32 %v883_v10, %v880_v14  ;;  %v888_v17 = vmul.f32 %v884_v11, %v881_v15 }
  0xce   : > { %2203 = vmatpush.msk.msra.mxu2 %vm566_vm0, %v887_v16  ;;  %2205 = vmatpush.msk.msra.mxu3 %vm566_vm0, %v888_v17 }
  0xcf   : > { %2204 = vmatmul.msk.f32.vlgmr.msra.gmra.mxu2 %vm562_vm2, %v2202_v18  ;;  %2206 = vmatmul.msk.f32.vlgmr.msra.gmra.mxu3 %vm562_vm2, %v2202_v18 }
  0xd2   : > { %v948_v23 = vpop.permute.xlu1 %947 }
  0xd3   : > { %v952_v24 = vsel %vm951_vm7, %v948_v23, %v950_v20  ;;  %v953_v25 = vsel %vm951_vm7, %v950_v20, %v948_v23 }
  0xd4   : > { %v959_v26 = vmul.f32 %v955_v21, %v952_v24  ;;  %v960_v28 = vmul.f32 %v956_v22, %v953_v25 }
  0xd6   : > { %2208 = vmatpush.msk.msrb.mxu0 %vm566_vm0, %v959_v26  ;;  %2210 = vmatpush.msk.msrb.mxu1 %vm566_vm0, %v960_v28 }
  0xd7   : > { %2209 = vmatmul.msk.f32.vlgmr.msrb.gmra.mxu0 %vm562_vm2, %v2207_v32  ;;  %2211 = vmatmul.msk.f32.vlgmr.msrb.gmra.mxu1 %vm562_vm2, %v2207_v32 }
  0xda   : > { %v1022_v36 = vpop.permute.xlu1 %1021  ;;  %v1020_v37 = vpop.permute.xlu0 %1019 }
  0xdb   : > { %v1024_v38 = vsel %vm1023_vm8, %v1020_v37, %v1022_v36  ;;  %v1025_v41 = vsel %vm1023_vm8, %v1022_v36, %v1020_v37 }
  0xdc   : > { %v1031_v46 = vmul.f32 %v1027_v34, %v1024_v38  ;;  %v1032_v47 = vmul.f32 %v1028_v35, %v1025_v41 }
  0xde   : > { %2213 = vmatpush.msk.msrb.mxu2 %vm566_vm0, %v1031_v46  ;;  %2215 = vmatpush.msk.msrb.mxu3 %vm566_vm0, %v1032_v47 }
  0xdf   : > { %2214 = vmatmul.msk.f32.vlgmr.msrb.gmra.mxu2 %vm562_vm2, %v2212_v48  ;;  %2216 = vmatmul.msk.f32.vlgmr.msrb.gmra.mxu3 %vm562_vm2, %v2212_v48 }
  0xe2   : > { %v1094_v53 = vpop.permute.xlu0 %1093 }
  0xe3   : > { %v1096_v54 = vsel %vm1095_vm9, %v1092_v52, %v1094_v53  ;;  %v1097_v55 = vsel %vm1095_vm9, %v1094_v53, %v1092_v52  ;;  %v1162_v53 = vpop.permute.xlu1 %1161 }
  0xe4   : > { %v1103_v59 = vmul.f32 %v1099_v50, %v1096_v54  ;;  %v1104_v60 = vmul.f32 %v1100_v51, %v1097_v55 }
  0xe6   : > { %2218 = vmatpush.msk.msra.mxu0 %vm566_vm0, %v1103_v59  ;;  %2220 = vmatpush.msk.msra.mxu1 %vm566_vm0, %v1104_v60 }
  0xe7   : > { %2219 = vmatmul.msk.f32.vlgmr.msra.gmra.mxu0 %vm562_vm2, %v2217_v61  ;;  %2221 = vmatmul.msk.f32.vlgmr.msra.gmra.mxu1 %vm562_vm2, %v2217_v61 }
 0x132   : > { %v639_v0 = vpop.f32.mrf.mxu2  ;;  %v659_v1 = vpop.f32.mrf.mxu3 }
 0x134   : > { %v590_v62 = vpop.f32.mrf.mxu0  ;;  %v610_v63 = vpop.f32.mrf.mxu1 }
 0x135   : > { %v640_v8 = vadd.f32 %v639_v0, %v590_v62  ;;  %v660_v9 = vadd.f32 %v659_v1, %v610_v63 }
 0x13c   : > { %v709_v2 = vpop.f32.mrf.mxu0  ;;  %v729_v4 = vpop.f32.mrf.mxu1 }
 0x13d   : > { %v732_v14 = vadd.f32 %v709_v2, %v640_v8  ;;  %v733_v15 = vadd.f32 %v729_v4, %v660_v9 }
 0x143   : > { %v781_v12 = vpop.f32.mrf.mxu2  ;;  %v801_v13 = vpop.f32.mrf.mxu3 }
 0x144   : > { %v845_v16 = vpop.f32.mrf.mxu0  ;;  %v865_v17 = vpop.f32.mrf.mxu1  ;;  %v804_v18 = vadd.f32 %v781_v12, %v732_v14  ;;  %v805_v20 = vadd.f32 %v801_v13, %v733_v15 }
 0x146   : > { %v868_v25 = vadd.f32 %v845_v16, %v804_v18  ;;  %v869_v26 = vadd.f32 %v865_v17, %v805_v20 }
 0x152   : > { %v917_v23 = vpop.f32.mrf.mxu2  ;;  %v937_v24 = vpop.f32.mrf.mxu3 }
 0x153   : > { %v940_v36 = vadd.f32 %v917_v23, %v868_v25  ;;  %v941_v37 = vadd.f32 %v937_v24, %v869_v26 }
 0x154   : > { %v989_v28 = vpop.f32.mrf.mxu0  ;;  %v1009_v32 = vpop.f32.mrf.mxu1 }
 0x155   : > { %v1012_v38 = vadd.f32 %v989_v28, %v940_v36  ;;  %v1013_v41 = vadd.f32 %v1009_v32, %v941_v37  ;;  %v1166_v32 = vld [vmem:[%s3166_s4] sm:$0xf] }
 0x162   : > { %v1061_v46 = vpop.f32.mrf.mxu2  ;;  %v1081_v47 = vpop.f32.mrf.mxu3 }
 0x163   : > { %v1084_v48 = vadd.f32 %v1061_v46, %v1012_v38  ;;  %v1085_v52 = vadd.f32 %v1081_v47, %v1013_v41  ;;  %v1167_v41 = vld [vmem:[%s3167_s5] sm:$0xf] }
 0x164   : > { %v1133_v54 = vpop.f32.mrf.mxu0  ;;  %v1153_v55 = vpop.f32.mrf.mxu1 }
 0x165   : > { %v1156_v59 = vadd.f32 %v1133_v54, %v1084_v48  ;;  %v1157_v60 = vadd.f32 %v1153_v55, %v1085_v52 }
 0x167   : > { %v1164_v61 = vadd.f32 %v1162_v53, %v1156_v59  ;;  %v1165_v62 = vadd.f32 %v1162_v53, %v1157_v60 }
 0x169   : > { %v1168_v63 = vsel %vm566_vm0, %v1164_v61, 0.0  ;;  %v1169_v0 = vsel %vm566_vm0, %v1165_v62, 0.0  ;;  %v1173_v1 = vmul.f32 %v1164_v61, %v1164_v61  ;;  %v1174_v2 = vmul.f32 %v1165_v62, %v1165_v62 }
 0x16a   : > { %v1170_v4 = vadd.f32 %v1169_v0, %v1168_v63 }
 0x16b   : > { %v1175_v8 = vsel %vm566_vm0, %v1173_v1, 0.0  ;;  %v1176_v9 = vsel %vm566_vm0, %v1174_v2, 0.0 }
 0x16c   : > { %1171 = vadd.xlane.f32.xlu2 %v1170_v4  ;;  %v1177_v12 = vadd.f32 %v1176_v9, %v1175_v8 }
 0x16e   : > { %1178 = vadd.xlane.f32.xlu0 %v1177_v12 }
 0x1df   : > { %v1172_v13 = vpop.xlane.xlu2 %1171 }
 0x1e0   : > { %v1180_v14 = vmul.f32 0.00390625, %v1172_v13  ;;  %v2223_v13 = vld [vmem:[%s3164_s2 + $0x28] sm:$0xf] }
 0x1e1   : > { %v1179_v15 = vpop.xlane.xlu0 %1178 }
 0x1e2   : > { %v1181_v16 = vmul.f32 0.00390625, %v1179_v15  ;;  %v1182_v17 = vmul.f32 %v1180_v14, %v1180_v14  ;;  %v1195_v47 = vsub.f32 %v1164_v61, %v1180_v14  ;;  %v1196_v48 = vsub.f32 %v1165_v62, %v1180_v14  ;;  %v2267_v61 = vld [vmem:[%s3165_s3 + $0x4] sm:$0xf] }
 0x1e4   : > { %v1183_v18 = vsub.f32 %v1181_v16, %v1182_v17 }
 0x1e6   : > { %v1184_v20 = vadd.f32 1e-05, %v1183_v18 }
 0x1e8   : > { %2354 = vrsqrt.f32 %v1184_v20  ;;  %vm1191_vm11 = vweird.f32 %v1184_v20 }
 0x1ee   : > { %v2355_v23 = vpop.eup %2354 }
 0x1ef   : > { %v1186_v24 = vmul.f32 %v2355_v23, %v1184_v20  ;;  %vm1192_vm10 = vweird.f32 %v2355_v23 }
 0x1f0   : > { %vm1193_vm12 = vmor %vm1191_vm11, %vm1192_vm10 }
 0x1f1   : > { %v1187_v25 = vmul.f32 %v2355_v23, %v1186_v24 }
 0x1f3   : > { %v1188_v26 = vmul.f32 0.5, %v1187_v25  ;;  %v2232_v25 = vld [vmem:[%s3164_s2 + $0x2c] sm:$0xf] }
 0x1f5   : > { %v1189_v28 = vsub.f32 1.5, %v1188_v26 }
 0x1f7   : > { %v1190_v36 = vmul.f32 %v2355_v23, %v1189_v28 }
 0x1f9   : > { %v1194_v37 = vsel %vm1193_vm12, %v2355_v23, %v1190_v36 }
 0x1fa   : > { %v1197_v38 = vmul.f32 %v1194_v37, %v1166_v32 }
 0x1fc   : > { %1200 = vperm.xlu1 %2350, %v1197_v38  }
 0x204   : > { %1207 = vperm.xlu1 %2350, %v1167_v41   ;;  %v2237_v41 = vld [vmem:[%s3164_s2 + $0x30] sm:$0xf] }
 0x26e   : > { %v1201_v46 = vpop.permute.xlu1 %1200 }
 0x26f   : > { %v1203_v52 = vmul.f32 %v1201_v46, %v1195_v47  ;;  %v1204_v53 = vmul.f32 %v1201_v46, %v1196_v48 }
 0x276   : > { %v1208_v54 = vpop.permute.xlu1 %1207 }
 0x277   : > { %v1210_v55 = vadd.f32 %v1208_v54, %v1203_v52  ;;  %v1211_v59 = vadd.f32 %v1208_v54, %v1204_v53 }
 0x279   : > { %v1212_v60 = vmax.f32 %v1210_v55, 0.0  ;;  %v1213_v63 = vmax.f32 %v1211_v59, 0.0  ;;  %v2247_v55 = vld [vmem:[%s3164_s2 + $0x38] sm:$0xf] }
 0x27b   : > { %1216 = vrot.lane.b32.xlu0 %v1213_v63, %s2500_s24  ;;  %1334 = vrot.lane.b32.xlu2 %v1213_v63, %s2502_s20  ;;  %v1454_v23 = vmul.f32 %v1212_v60, %v807_v7  ;;  %v1455_v24 = vmul.f32 %v1213_v63, %v808_v6 }
 0x27c   : > { %1224 = vrot.lane.b32.xlu1 %v1212_v60, %s2501_s18 }
 0x283   : > { %1572 = vrot.lane.b32.xlu0 %v1213_v63, %s2505_s27  ;;  %1570 = vrot.lane.b32.xlu2 %v1212_v60, %s2505_s27 }
 0x284   : > { %1226 = vrot.lane.b32.xlu1 %v1213_v63, %s2501_s18 }
 0x28b   : > { %1692 = vrot.lane.b32.xlu0 %v1212_v60, %s2507_s6  ;;  %1511 = vrot.lane.b32.xlu2 %v1213_v63, %s2504_s26 }
 0x28c   : > { %1332 = vrot.lane.b32.xlu1 %v1212_v60, %s2502_s20  ;;  %s494_s20 = scalar_lea.vmem [#allocation7], %s2167_s22  ;;  %s2442_s22 = scalar_lea.hbm %s3176_s14, 16 }
 0x293   : > { %1633 = vrot.lane.b32.xlu0 %v1213_v63, %s2506_s29  ;;  %1631 = vrot.lane.b32.xlu2 %v1212_v60, %s2506_s29 }
 0x294   : > { %1214 = vrot.lane.b32.xlu1 %v1212_v60, %s2500_s24 }
 0x29c   : > { %1393 = vrot.lane.b32.xlu1 %v1212_v60, %s3194_s25 }
 0x2a4   : > { %1395 = vrot.lane.b32.xlu1 %v1213_v63, %s3194_s25  ;;  %s2276_s25 = sshll.u32 %s2605_s17, 3  ;;  %s2062_s17 = scalar_lea.sflag [#allocation4], %s492_s21 }
 0x2a5   : > { %s2073_s24 = scalar_lea.hbm %s3176_s14, %s2276_s25 }
 0x2a6   : > { %s2077_s29 = sshll.u32 %s2073_s24, 4  ;;  %s2078_s29 = int_to_ptr.hbm [resolvable:$true] %s2077_s29 }
 0x2ac   : > { %1509 = vrot.lane.b32.xlu1 %v1212_v60, %s2504_s26  ;;  %s2075_s26 = sshll.u32 %s494_s20, 4  ;;  %s2076_s26 = int_to_ptr.vmem [resolvable:$true] %s2075_s26 }
 0x2b4   : > { %1694 = vrot.lane.b32.xlu1 %v1213_v63, %s2507_s6  ;;  %v2262_v63 = vld [vmem:[%s3164_s2 + $0x44] sm:$0xf]  ;;  %s2436_s6 = sshra.s32 %s2078_s29, 4  ;;  %s2437_s6 = int_to_ptr.hbm [resolvable:$true] %s2436_s6 }
 0x2b5   : > { %s2438_s28 = scalar_lea.hbm %s2437_s6, 8  ;;  %p2443_p3 = scmp.lt.s32.totalorder %s2437_s6, %s3176_s14 }
 0x2b6   : > { %p2439_p0 = scmp.ne.s32.totalorder %s2437_s6, %s2438_s28  ;;  %p2444_p4 = scmp.lt.s32.totalorder %s2442_s22, %s2438_s28 }
 0x2b8   : > { %p2440_p1 = pnand %p2439_p0, %p2622_p5  ;;  %p2445_p7 = por %p2444_p4, %p2443_p3 }
 0x2ba   : > { %p2441_p2 = pneg %p2440_p1 }
 0x2bc   : > { %1757 = vperm.xlu1 %2350, %v2267_v61   ;;  %p2446_p8 = pnand %p2445_p7, %p2441_p2 }
 0x2d5   : > { %v1335_v1 = vpop.permute.xlu2 %1334 }
 0x2dd   : > { %v1571_v16 = vpop.permute.xlu2 %1570 }
 0x2e5   : > { %v1512_v26 = vpop.permute.xlu2 %1511 }
 0x2ed   : > { %v1217_v0 = vpop.permute.xlu0 %1216  ;;  %v1632_v47 = vpop.permute.xlu2 %1631 }
 0x2ee   : > { %v1225_v62 = vpop.permute.xlu1 %1224 }
 0x2f5   : > { %v1573_v14 = vpop.permute.xlu0 %1572 }
 0x2f6   : > { %v1227_v2 = vpop.permute.xlu1 %1226  ;;  %v1575_v17 = vsel %vm951_vm7, %v1573_v14, %v1571_v16 }
 0x2f7   : > { %v1228_v4 = vsel %vm550_vm4, %v1225_v62, %v1227_v2  ;;  %v1229_v8 = vsel %vm550_vm4, %v1227_v2, %v1225_v62  ;;  %v1577_v40 = vmul.f32 %v1575_v17, %v956_v22  ;;  %v2242_v22 = vld [vmem:[%s3164_s2 + $0x34] sm:$0xf] }
 0x2f8   : > { %v1230_v9 = vmul.f32 %v1229_v8, %v554_v42  ;;  %v1231_v12 = vmul.f32 %v1228_v4, %v555_v43  ;;  %v1574_v43 = vsel %vm951_vm7, %v1571_v16, %v1573_v14 }
 0x2fa   : > { %2224 = vmatpush.msk.msra.mxu2 %vm566_vm0, %v1230_v9  ;;  %2226 = vmatpush.msk.msra.mxu3 %vm566_vm0, %v1231_v12 }
 0x2fb   : > { %2225 = vmatmul.msk.f32.vlgmr.msra.gmra.mxu2 %vm562_vm2, %v2223_v13  ;;  %2227 = vmatmul.msk.f32.vlgmr.msra.gmra.mxu3 %vm562_vm2, %v2223_v13 }
 0x2fe   : > { %v1333_v15 = vpop.permute.xlu1 %1332 }
 0x2ff   : > { %v1336_v42 = vsel %vm671_vm3, %v1333_v15, %v1335_v1  ;;  %v1337_v39 = vsel %vm671_vm3, %v1335_v1, %v1333_v15 }
 0x300   : > { %v1338_v18 = vmul.f32 %v1337_v39, %v675_v44  ;;  %v1339_v20 = vmul.f32 %v1336_v42, %v676_v45  ;;  %v1576_v44 = vmul.f32 %v1574_v43, %v955_v21  ;;  %v2222_v21 = vld [vmem:[%s3164_s2 + $0x24] sm:$0xf] }
 0x302   : > { %2233 = vmatpush.msk.msrb.mxu2 %vm566_vm0, %v1338_v18  ;;  %2235 = vmatpush.msk.msrb.mxu3 %vm566_vm0, %v1339_v20 }
 0x303   : > { %2234 = vmatmul.msk.f32.vlgmr.msrb.gmra.mxu2 %vm562_vm2, %v2232_v25  ;;  %2236 = vmatmul.msk.f32.vlgmr.msrb.gmra.mxu3 %vm562_vm2, %v2232_v25 }
 0x304   : > { %2243 = vmatpush.msk.msra.mxu2 %vm566_vm0, %v1454_v23  ;;  %2245 = vmatpush.msk.msra.mxu3 %vm566_vm0, %v1455_v24 }
 0x306   : > { %2253 = vmatpush.msk.msrb.mxu2 %vm566_vm0, %v1576_v44  ;;  %2255 = vmatpush.msk.msrb.mxu3 %vm566_vm0, %v1577_v40  ;;  %v1215_v3 = vpop.permute.xlu1 %1214 }
 0x307   : > { %v1218_v6 = vsel %vm530_vm1, %v1215_v3, %v1217_v0  ;;  %v1219_v7 = vsel %vm530_vm1, %v1217_v0, %v1215_v3 }
 0x308   : > { %v1220_v45 = vmul.f32 %v1219_v7, %v534_v30  ;;  %v1221_v19 = vmul.f32 %v1218_v6, %v535_v31  ;;  %v2252_v30 = vld [vmem:[%s3164_s2 + $0x3c] sm:$0xf]  ;;  %v1693_v31 = vpop.permute.xlu0 %1692 }
 0x30a   : > { %2228 = vmatpush.msk.msrb.mxu0 %vm566_vm0, %v1220_v45  ;;  %2230 = vmatpush.msk.msrb.mxu1 %vm566_vm0, %v1221_v19 }
 0x30b   : > { %2229 = vmatmul.msk.f32.vlgmr.msrb.gmra.mxu0 %vm562_vm2, %v2222_v21  ;;  %2231 = vmatmul.msk.f32.vlgmr.msrb.gmra.mxu1 %vm562_vm2, %v2222_v21 }
 0x30c   : > { %2244 = vmatmul.msk.f32.vlgmr.msra.gmra.mxu2 %vm562_vm2, %v2242_v22  ;;  %2246 = vmatmul.msk.f32.vlgmr.msra.gmra.mxu3 %vm562_vm2, %v2242_v22 }
 0x30e   : > { %v1394_v29 = vpop.permute.xlu1 %1393 }
 0x310   : > { %v1634_v46 = vpop.permute.xlu0 %1633 }
 0x311   : > { %v1636_v56 = vsel %vm1023_vm8, %v1634_v46, %v1632_v47 }
 0x312   : > { %v1638_v60 = vmul.f32 %v1636_v56, %v1028_v35  ;;  %v2257_v35 = vld [vmem:[%s3164_s2 + $0x40] sm:$0xf] }
 0x314   : > { %2254 = vmatmul.msk.f32.vlgmr.msrb.gmra.mxu2 %vm562_vm2, %v2252_v30  ;;  %2256 = vmatmul.msk.f32.vlgmr.msrb.gmra.mxu3 %vm562_vm2, %v2252_v30 }
 0x316   : > { %v1396_v28 = vpop.permute.xlu1 %1395 }
 0x317   : > { %v1397_v32 = vsel %vm743_vm5, %v1394_v29, %v1396_v28  ;;  %v1398_v36 = vsel %vm743_vm5, %v1396_v28, %v1394_v29 }
 0x318   : > { %v1399_v37 = vmul.f32 %v1398_v36, %v747_v57  ;;  %v1400_v38 = vmul.f32 %v1397_v32, %v748_v58  ;;  %v1635_v57 = vsel %vm1023_vm8, %v1632_v47, %v1634_v46 }
 0x319   : > { %v1637_v59 = vmul.f32 %v1635_v57, %v1027_v34 }
 0x31a   : > { %2238 = vmatpush.msk.msra.mxu0 %vm566_vm0, %v1399_v37  ;;  %2240 = vmatpush.msk.msra.mxu1 %vm566_vm0, %v1400_v38 }
 0x31b   : > { %2239 = vmatmul.msk.f32.vlgmr.msra.gmra.mxu0 %vm562_vm2, %v2237_v41  ;;  %2241 = vmatmul.msk.f32.vlgmr.msra.gmra.mxu1 %vm562_vm2, %v2237_v41 }
 0x31e   : > { %v1510_v48 = vpop.permute.xlu1 %1509 }
 0x31f   : > { %v1513_v58 = vsel %vm879_vm6, %v1510_v48, %v1512_v26  ;;  %v1514_v52 = vsel %vm879_vm6, %v1512_v26, %v1510_v48 }
 0x320   : > { %v1515_v53 = vmul.f32 %v1513_v58, %v883_v10  ;;  %v1516_v54 = vmul.f32 %v1514_v52, %v884_v11  ;;  %v1827_v52 = vld [vmem:[#allocation2 + $0x78] sm:$0xff] }
 0x322   : > { %2248 = vmatpush.msk.msrb.mxu0 %vm566_vm0, %v1515_v53  ;;  %2250 = vmatpush.msk.msrb.mxu1 %vm566_vm0, %v1516_v54  ;;  %v1843_v53 = vld [vmem:[#allocation2 + $0xf8] sm:$0xff]  ;;  %v1826_v54 = vld [vmem:[#allocation2 + $0x70] sm:$0xff] }
 0x323   : > { %2249 = vmatmul.msk.f32.vlgmr.msrb.gmra.mxu0 %vm562_vm2, %v2247_v55  ;;  %2251 = vmatmul.msk.f32.vlgmr.msrb.gmra.mxu1 %vm562_vm2, %v2247_v55  ;;  %v1842_v55 = vld [vmem:[#allocation2 + $0xf0] sm:$0xff] }
 0x324   : > { %2258 = vmatpush.msk.msra.mxu0 %vm566_vm0, %v1637_v59  ;;  %2260 = vmatpush.msk.msra.mxu1 %vm566_vm0, %v1638_v60  ;;  %v1825_v60 = vld [vmem:[#allocation2 + $0x68] sm:$0xff] }
 0x326   : > { %v1695_v5 = vpop.permute.xlu1 %1694  ;;  %1848 = vmatpush.msrb.mxu0 %v1827_v52  ;;  %1868 = vmatpush.msrb.mxu1 %v1843_v53  ;;  %v1955_v52 = vld [vmem:[#allocation5 + $0xe0] sm:$0xff]  ;;  %v1956_v53 = vld [vmem:[#allocation5 + $0xe8] sm:$0xff] }
 0x327   : > { %v1696_v10 = vsel %vm1095_vm9, %v1693_v31, %v1695_v5  ;;  %v1697_v11 = vsel %vm1095_vm9, %v1695_v5, %v1693_v31  ;;  %v1841_v5 = vld [vmem:[#allocation2 + $0xe8] sm:$0xff] }
 0x328   : > { %v1698_v33 = vmul.f32 %v1696_v10, %v1099_v50  ;;  %v1699_v34 = vmul.f32 %v1697_v11, %v1100_v51  ;;  %1849 = vmatpush.msrb.mxu0 %v1826_v54  ;;  %1869 = vmatpush.msrb.mxu1 %v1842_v55  ;;  %v1824_v10 = vld [vmem:[#allocation2 + $0x60] sm:$0xff]  ;;  %v1953_v54 = vld [vmem:[#allocation5 + $0xd0] sm:$0xff] }
 0x329   : > { %v1840_v11 = vld [vmem:[#allocation2 + $0xe0] sm:$0xff] }
 0x32a   : > { %2263 = vmatpush.msk.msra.mxu2 %vm566_vm0, %v1698_v33  ;;  %2265 = vmatpush.msk.msra.mxu3 %vm566_vm0, %v1699_v34  ;;  %v1823_v33 = vld [vmem:[#allocation2 + $0x58] sm:$0xff] }
 0x32b   : > { %2259 = vmatmul.msk.f32.vlgmr.msra.gmra.mxu0 %vm562_vm2, %v2257_v35  ;;  %2261 = vmatmul.msk.f32.vlgmr.msra.gmra.mxu1 %vm562_vm2, %v2257_v35  ;;  %v1839_v34 = vld [vmem:[#allocation2 + $0xd8] sm:$0xff]  ;;  %v1822_v35 = vld [vmem:[#allocation2 + $0x50] sm:$0xff] }
 0x32c   : > { %2264 = vmatmul.msk.f32.vlgmr.msra.gmra.mxu2 %vm562_vm2, %v2262_v63  ;;  %2266 = vmatmul.msk.f32.vlgmr.msra.gmra.mxu3 %vm562_vm2, %v2262_v63  ;;  %v1838_v63 = vld [vmem:[#allocation2 + $0xd0] sm:$0xff] }
 0x32d   : > { %1850 = vmatpush.msrb.mxu0 %v1825_v60  ;;  %1870 = vmatpush.msrb.mxu1 %v1841_v5  ;;  %v1951_v5 = vld [vmem:[#allocation5 + $0xc0] sm:$0xff] }
 0x32e   : > { %v1758_v22 = vpop.permute.xlu1 %1757 }
 0x32f   : > { %1851 = vmatpush.msrb.mxu0 %v1824_v10  ;;  %1871 = vmatpush.msrb.mxu1 %v1840_v11  ;;  %v1952_v11 = vld [vmem:[#allocation5 + $0xc8] sm:$0xff] }
 0x331   : > { %1852 = vmatpush.msrb.mxu0 %v1823_v33  ;;  %1872 = vmatpush.msrb.mxu1 %v1839_v34 }
 0x333   : > { %1853 = vmatpush.msrb.mxu0 %v1822_v35  ;;  %1873 = vmatpush.msrb.mxu1 %v1838_v63  ;;  %v1949_v35 = vld [vmem:[#allocation5 + $0xb0] sm:$0xff]  ;;  %v1950_v63 = vld [vmem:[#allocation5 + $0xb8] sm:$0xff] }
 0x37e   : > { %v1260_v27 = vpop.f32.mrf.mxu2  ;;  %v1280_v49 = vpop.f32.mrf.mxu3 }
 0x386   : > { %v1368_v61 = vpop.f32.mrf.mxu2  ;;  %v1388_v62 = vpop.f32.mrf.mxu3 }
 0x388   : > { %v1309_v50 = vpop.f32.mrf.mxu0  ;;  %v1329_v51 = vpop.f32.mrf.mxu1 }
 0x389   : > { %v1310_v2 = vadd.f32 %v1309_v50, %v1260_v27  ;;  %v1330_v4 = vadd.f32 %v1329_v51, %v1280_v49  ;;  %v1821_v49 = vld [vmem:[#allocation2 + $0x48] sm:$0xff] }
 0x38a   : > { %v1837_v50 = vld [vmem:[#allocation2 + $0xc8] sm:$0xff]  ;;  %1854 = vmatpush.msrb.mxu0 %v1821_v49  ;;  %v1947_v49 = vld [vmem:[#allocation5 + $0xa0] sm:$0xff] }
 0x38b   : > { %v1391_v12 = vadd.f32 %v1368_v61, %v1310_v2  ;;  %v1392_v13 = vadd.f32 %v1388_v62, %v1330_v4  ;;  %v1820_v61 = vld [vmem:[#allocation2 + $0x40] sm:$0xff]  ;;  %1874 = vmatpush.msrb.mxu1 %v1837_v50  ;;  %v1835_v2 = vld [vmem:[#allocation2 + $0xb8] sm:$0xff]  ;;  %v1948_v50 = vld [vmem:[#allocation5 + $0xa8] sm:$0xff] }
 0x38c   : > { %v1836_v62 = vld [vmem:[#allocation2 + $0xc0] sm:$0xff]  ;;  %1855 = vmatpush.msrb.mxu0 %v1820_v61  ;;  %v1945_v61 = vld [vmem:[#allocation5 + $0x90] sm:$0xff] }
 0x38d   : > { %1875 = vmatpush.msrb.mxu1 %v1836_v62  ;;  %v1946_v62 = vld [vmem:[#allocation5 + $0x98] sm:$0xff] }
 0x38f   : > { %v1484_v8 = vpop.f32.mrf.mxu2  ;;  %v1504_v9 = vpop.f32.mrf.mxu3  ;;  %1876 = vmatpush.msrb.mxu1 %v1835_v2  ;;  %v1941_v2 = vld [vmem:[#allocation5 + $0x70] sm:$0xff] }
 0x397   : > { %v1606_v17 = vpop.f32.mrf.mxu2  ;;  %v1626_v18 = vpop.f32.mrf.mxu3 }
 0x398   : > { %v1429_v0 = vpop.f32.mrf.mxu0  ;;  %v1449_v1 = vpop.f32.mrf.mxu1 }
 0x399   : > { %v1452_v16 = vadd.f32 %v1429_v0, %v1391_v12  ;;  %v1453_v42 = vadd.f32 %v1449_v1, %v1392_v13  ;;  %v1819_v1 = vld [vmem:[#allocation2 + $0x38] sm:$0xff] }
 0x39a   : > { %1856 = vmatpush.msrb.mxu0 %v1819_v1  ;;  %v2268_v13 = vld [vmem:[%s3166_s4 + $0x4] sm:$0xf]  ;;  %v1944_v1 = vld [vmem:[#allocation5 + $0x88] sm:$0xff] }
 0x39b   : > { %v1507_v39 = vadd.f32 %v1484_v8, %v1452_v16  ;;  %v1508_v43 = vadd.f32 %v1504_v9, %v1453_v42  ;;  %v1818_v8 = vld [vmem:[#allocation2 + $0x30] sm:$0xff]  ;;  %v2269_v42 = vld [vmem:[%s3167_s5 + $0x4] sm:$0xf] }
 0x39c   : > { %v1834_v9 = vld [vmem:[#allocation2 + $0xb0] sm:$0xff]  ;;  %1857 = vmatpush.msrb.mxu0 %v1818_v8  ;;  %v1939_v8 = vld [vmem:[#allocation5 + $0x60] sm:$0xff] }
 0x39d   : > { %1877 = vmatpush.msrb.mxu1 %v1834_v9  ;;  %v1940_v9 = vld [vmem:[#allocation5 + $0x68] sm:$0xff] }
 0x3a0   : > { %v1545_v14 = vpop.f32.mrf.mxu0  ;;  %v1565_v15 = vpop.f32.mrf.mxu1 }
 0x3a1   : > { %v1568_v20 = vadd.f32 %v1545_v14, %v1507_v39  ;;  %v1569_v23 = vadd.f32 %v1565_v15, %v1508_v43  ;;  %v1817_v39 = vld [vmem:[#allocation2 + $0x28] sm:$0xff] }
 0x3a2   : > { %v1833_v43 = vld [vmem:[#allocation2 + $0xa8] sm:$0xff]  ;;  %1858 = vmatpush.msrb.mxu0 %v1817_v39 }
 0x3a3   : > { %v1629_v44 = vadd.f32 %v1606_v17, %v1568_v20  ;;  %v1630_v40 = vadd.f32 %v1626_v18, %v1569_v23  ;;  %v1816_v17 = vld [vmem:[#allocation2 + $0x20] sm:$0xff]  ;;  %1878 = vmatpush.msrb.mxu1 %v1833_v43  ;;  %v1815_v20 = vld [vmem:[#allocation2 + $0x18] sm:$0xff]  ;;  %v1936_v39 = vld [vmem:[#allocation5 + $0x48] sm:$0xff] }
 0x3a4   : > { %v1832_v18 = vld [vmem:[#allocation2 + $0xa0] sm:$0xff]  ;;  %v1831_v23 = vld [vmem:[#allocation2 + $0x98] sm:$0xff]  ;;  %1859 = vmatpush.msrb.mxu0 %v1816_v17  ;;  %v1933_v43 = vld [vmem:[#allocation5 + $0x30] sm:$0xff] }
 0x3a5   : > { %1879 = vmatpush.msrb.mxu1 %v1832_v18  ;;  %v1934_v18 = vld [vmem:[#allocation5 + $0x38] sm:$0xff] }
 0x3a6   : > { %1860 = vmatpush.msrb.mxu0 %v1815_v20 }
 0x3a7   : > { %1880 = vmatpush.msrb.mxu1 %v1831_v23  ;;  %v1888_v23 = vld [vmem:[%s3170_s8] sm:$0xf] }
 0x3a8   : > { %v1667_v24 = vpop.f32.mrf.mxu0  ;;  %v1687_v25 = vpop.f32.mrf.mxu1 }
 0x3a9   : > { %v1690_v3 = vadd.f32 %v1667_v24, %v1629_v44  ;;  %v1691_v6 = vadd.f32 %v1687_v25, %v1630_v40  ;;  %v1814_v24 = vld [vmem:[#allocation2 + $0x10] sm:$0xff]  ;;  %v1813_v44 = vld [vmem:[#allocation2 + $0x8] sm:$0xff] }
 0x3aa   : > { %v1830_v25 = vld [vmem:[#allocation2 + $0x90] sm:$0xff]  ;;  %1861 = vmatpush.msrb.mxu0 %v1814_v24  ;;  %v1829_v40 = vld [vmem:[#allocation2 + $0x88] sm:$0xff] }
 0x3ab   : > { %1881 = vmatpush.msrb.mxu1 %v1830_v25 }
 0x3ac   : > { %1862 = vmatpush.msrb.mxu0 %v1813_v44 }
 0x3ad   : > { %1882 = vmatpush.msrb.mxu1 %v1829_v40  ;;  %v1931_v40 = vld [vmem:[#allocation5 + $0x20] sm:$0xff] }
 0x3af   : > { %v1728_v7 = vpop.f32.mrf.mxu2  ;;  %v1748_v45 = vpop.f32.mrf.mxu3 }
 0x3b0   : > { %v1751_v19 = vadd.f32 %v1728_v7, %v1690_v3  ;;  %v1752_v21 = vadd.f32 %v1748_v45, %v1691_v6  ;;  %v1812_v3 = vld [vmem:[#allocation2] sm:$0xff] }
 0x3b1   : > { %v1828_v6 = vld [vmem:[#allocation2 + $0x80] sm:$0xff]  ;;  %1863 = vmatpush.msrb.mxu0 %v1812_v3  ;;  %v1932_v3 = vld [vmem:[#allocation5 + $0x28] sm:$0xff] }
 0x3b2   : > { %v3052_v29 = vadd.f32 %v1758_v22, %v1751_v19  ;;  %v3054_v30 = vadd.f32 %v1758_v22, %v1752_v21  ;;  %1883 = vmatpush.msrb.mxu1 %v1828_v6  ;;  %v1929_v6 = vld [vmem:[#allocation5 + $0x10] sm:$0xff] }
 0x3b4   : > { %v1766_v31 = vsel %vm566_vm0, %v3052_v29, 0.0  ;;  %v1767_v26 = vsel %vm566_vm0, %v3054_v30, 0.0  ;;  %v1771_v28 = vmul.f32 %v3052_v29, %v3052_v29  ;;  %v1772_v32 = vmul.f32 %v3054_v30, %v3054_v30 }
 0x3b5   : > { %v1768_v36 = vadd.f32 %v1767_v26, %v1766_v31 }
 0x3b6   : > { %v1773_v37 = vsel %vm566_vm0, %v1771_v28, 0.0  ;;  %v1774_v38 = vsel %vm566_vm0, %v1772_v32, 0.0 }
 0x3b7   : > { %1769 = vadd.xlane.f32.xlu2 %v1768_v36  ;;  %v1775_v41 = vadd.f32 %v1774_v38, %v1773_v37 }
 0x3b9   : > { %1776 = vadd.xlane.f32.xlu0 %v1775_v41 }
 0x42a   : > { %v1770_v46 = vpop.xlane.xlu2 %1769 }
 0x42b   : > { %v3066_v47 = vmul.f32 0.00390625, %v1770_v46 }
 0x42c   : > { %v1777_v48 = vpop.xlane.xlu0 %1776 }
 0x42d   : > { %v1779_v57 = vmul.f32 0.00390625, %v1777_v48  ;;  %v1780_v56 = vmul.f32 %v3066_v47, %v3066_v47  ;;  %v1793_v45 = vsub.f32 %v3052_v29, %v3066_v47  ;;  %v1794_v19 = vsub.f32 %v3054_v30, %v3066_v47  ;;  %v2353_v29 = vld [vmem:[%s3169_s7] ss:$0 sm:$0xff] }
 0x42f   : > { %v1781_v58 = vsub.f32 %v1779_v57, %v1780_v56  ;;  %v1889_v57 = vld [vmem:[%s3171_s9] sm:$0xf]  ;;  %v1957_v56 = vld [vmem:[#allocation5 + $0xf0] sm:$0xff] }
 0x430   : > { %1965 = vmatpush.msrb.mxu2 %v1957_v56 }
 0x431   : > { %v1782_v59 = vadd.f32 1e-05, %v1781_v58  ;;  %v1958_v58 = vld [vmem:[#allocation5 + $0xf8] sm:$0xff] }
 0x432   : > { %1985 = vmatpush.msrb.mxu3 %v1958_v58  ;;  %1966 = vmatpush.msrb.mxu2 %v1955_v52 }
 0x433   : > { %2356 = vrsqrt.f32 %v1782_v59  ;;  %vm1789_vm14 = vweird.f32 %v1782_v59 }
 0x434   : > { %1986 = vmatpush.msrb.mxu3 %v1956_v53  ;;  %1967 = vmatpush.msrb.mxu2 %v1953_v54 }
 0x436   : > { %1968 = vmatpush.msrb.mxu2 %v1951_v5 }
 0x438   : > { %1969 = vmatpush.msrb.mxu2 %v1949_v35 }
 0x439   : > { %v2357_v27 = vpop.eup %2356 }
 0x43a   : > { %v1784_v51 = vmul.f32 %v2357_v27, %v1782_v59  ;;  %vm1790_vm13 = vweird.f32 %v2357_v27  ;;  %v1954_v59 = vld [vmem:[#allocation5 + $0xd8] sm:$0xff]  ;;  %1970 = vmatpush.msrb.mxu2 %v1947_v49 }
 0x43b   : > { %vm1791_vm15 = vmor %vm1789_vm14, %vm1790_vm13  ;;  %1987 = vmatpush.msrb.mxu3 %v1954_v59 }
 0x43c   : > { %v1785_v0 = vmul.f32 %v2357_v27, %v1784_v51  ;;  %1971 = vmatpush.msrb.mxu2 %v1945_v61 }
 0x43d   : > { %1988 = vmatpush.msrb.mxu3 %v1952_v11 }
 0x43e   : > { %v1786_v4 = vmul.f32 0.5, %v1785_v0  ;;  %v1943_v0 = vld [vmem:[#allocation5 + $0x80] sm:$0xff] }
 0x43f   : > { %1989 = vmatpush.msrb.mxu3 %v1950_v63  ;;  %1972 = vmatpush.msrb.mxu2 %v1943_v0 }
 0x440   : > { %v1787_v12 = vsub.f32 1.5, %v1786_v4  ;;  %v1942_v4 = vld [vmem:[#allocation5 + $0x78] sm:$0xff] }
 0x441   : > { %1990 = vmatpush.msrb.mxu3 %v1948_v50  ;;  %1973 = vmatpush.msrb.mxu2 %v1941_v2 }
 0x442   : > { %v1788_v14 = vmul.f32 %v2357_v27, %v1787_v12 }
 0x443   : > { %1991 = vmatpush.msrb.mxu3 %v1946_v62  ;;  %1974 = vmatpush.msrb.mxu2 %v1939_v8 }
 0x444   : > { %v1792_v15 = vsel %vm1791_vm15, %v2357_v27, %v1788_v14 }
 0x445   : > { %v1795_v16 = vmul.f32 %v2268_v13, %v1792_v15  ;;  %1992 = vmatpush.msrb.mxu3 %v1944_v1  ;;  %v1937_v13 = vld [vmem:[#allocation5 + $0x50] sm:$0xff]  ;;  %v1938_v15 = vld [vmem:[#allocation5 + $0x58] sm:$0xff] }
 0x446   : > { %1975 = vmatpush.msrb.mxu2 %v1937_v13  ;;  %v2005_v1 = vld [vmem:[%s3174_s12] sm:$0xf] }
 0x447   : > { %1798 = vperm.xlu1 %2350, %v1795_v16   ;;  %1993 = vmatpush.msrb.mxu3 %v1942_v4  ;;  %v1935_v16 = vld [vmem:[#allocation5 + $0x40] sm:$0xff] }
 0x448   : > { %1976 = vmatpush.msrb.mxu2 %v1935_v16 }
 0x449   : > { %1994 = vmatpush.msrb.mxu3 %v1940_v9 }
 0x44a   : > { %1977 = vmatpush.msrb.mxu2 %v1933_v43 }
 0x44b   : > { %1995 = vmatpush.msrb.mxu3 %v1938_v15 }
 0x44c   : > { %1978 = vmatpush.msrb.mxu2 %v1931_v40 }
 0x44d   : > { %1996 = vmatpush.msrb.mxu3 %v1936_v39 }
 0x44e   : > { %1979 = vmatpush.msrb.mxu2 %v1929_v6 }
 0x44f   : > { %1805 = vperm.xlu1 %2350, %v2269_v42   ;;  %1997 = vmatpush.msrb.mxu3 %v1934_v18 }
 0x451   : > { %1998 = vmatpush.msrb.mxu3 %v1932_v3 }
 0x4b9   : > { %v1799_v7 = vpop.permute.xlu1 %1798 }
 0x4ba   : > { %v1801_v21 = vmul.f32 %v1799_v7, %v1793_v45  ;;  %v1802_v22 = vmul.f32 %v1799_v7, %v1794_v19  ;;  %v1930_v7 = vld [vmem:[#allocation5 + $0x18] sm:$0xff]  ;;  %v1927_v45 = vld [vmem:[#allocation5] sm:$0xff]  ;;  %v1928_v19 = vld [vmem:[#allocation5 + $0x8] sm:$0xff] }
 0x4bb   : > { %1999 = vmatpush.msrb.mxu3 %v1930_v7  ;;  %1980 = vmatpush.msrb.mxu2 %v1927_v45 }
 0x4bd   : > { %2000 = vmatpush.msrb.mxu3 %v1928_v19 }
 0x4c1   : > { %v1806_v31 = vpop.permute.xlu1 %1805 }
 0x4c2   : > { %v3080_v26 = vadd.f32 %v1806_v31, %v1801_v21  ;;  %v3082_v28 = vadd.f32 %v1806_v31, %v1802_v22 }
 0x4c4   : > { %v1810_v32 = vmax.f32 %v3080_v26, 0.0  ;;  %v1811_v36 = vmax.f32 %v3082_v28, 0.0 }
 0x4c6   : > { %1864 = vmatmul.f32.vlgmr.msrb.gmra.mxu0 %v1810_v32  ;;  %1884 = vmatmul.f32.vlgmr.msrb.gmra.mxu1 %v1811_v36 }
 0x543   : > { %v1865_v30 = vpop.f32.mrf.mxu0  ;;  %v1885_v38 = vpop.f32.mrf.mxu1 }
 0x544   : > { %v1866_v37 = vadd.f32 %v2353_v29, %v1865_v30 }
 0x546   : > { %v3093_v41 = vadd.f32 %v1885_v38, %v1866_v37  ;;  %v1959_v38 = vld [vmem:[%s3173_s11] sm:$0x3] }
 0x548   : > { %v1890_v46 = vsel %vm566_vm0, %v3093_v41, 0.0  ;;  %v1893_v47 = vmul.f32 %v3093_v41, %v3093_v41 }
 0x549   : > { %1891 = vadd.xlane.f32.xlu1 %v1890_v46  ;;  %v1961_v46 = vperm.slane %v1959_v38, 0 }
 0x54a   : > { %v1894_v48 = vsel %vm566_vm0, %v1893_v47, 0.0  ;;  %v1962_v47 = vperm.slane %v1959_v38, 1 }
 0x54b   : > { %1895 = vadd.xlane.f32.xlu2 %v1894_v48 }
 0x563   : > { %1922 = vperm.xlu2 %2352, %v1889_v57  }
 0x5bc   : > { %v1892_v55 = vpop.xlane.xlu1 %1891 }
 0x5bd   : > { %v3103_v60 = vmul.f32 0.0078125, %v1892_v55 }
 0x5be   : > { %v1896_v10 = vpop.xlane.xlu2 %1895 }
 0x5bf   : > { %v1899_v33 = vmul.f32 %v3103_v60, %v3103_v60  ;;  %v1898_v34 = vmul.f32 0.0078125, %v1896_v10  ;;  %v1912_v21 = vsub.f32 %v3093_v41, %v3103_v60  ;;  %v2006_v10 = vld [vmem:[%s3175_s13] sm:$0xf] }
 0x5c1   : > { %v1900_v27 = vsub.f32 %v1898_v34, %v1899_v33 }
 0x5c3   : > { %v1901_v51 = vadd.f32 1e-05, %v1900_v27 }
 0x5c5   : > { %2358 = vrsqrt.f32 %v1901_v51  ;;  %vm1908_vm2 = vweird.f32 %v1901_v51 }
 0x5c6   : > { %v1923_v31 = vpop.permute.xlu2 %1922 }
 0x5cb   : > { %v2359_v12 = vpop.eup %2358 }
 0x5cc   : > { %v1903_v14 = vmul.f32 %v2359_v12, %v1901_v51  ;;  %vm1909_vm1 = vweird.f32 %v2359_v12 }
 0x5cd   : > { %vm1910_vm3 = vmor %vm1908_vm2, %vm1909_vm1 }
 0x5ce   : > { %v1904_v42 = vmul.f32 %v2359_v12, %v1903_v14 }
 0x5d0   : > { %v1905_v17 = vmul.f32 0.5, %v1904_v42 }
 0x5d2   : > { %v1906_v20 = vsub.f32 1.5, %v1905_v17 }
 0x5d4   : > { %v1907_v24 = vmul.f32 %v2359_v12, %v1906_v20 }
 0x5d6   : > { %v1911_v25 = vsel %vm1910_vm3, %v2359_v12, %v1907_v24 }
 0x5d7   : > { %v1913_v44 = vmul.f32 %v1911_v25, %v1888_v23 }
 0x5d9   : > { %1916 = vperm.xlu0 %2351, %v1913_v44  }
 0x64b   : > { %v1917_v22 = vpop.permute.xlu0 %1916 }
 0x64c   : > { %v1919_v29 = vmul.f32 %v1917_v22, %v1912_v21 }
 0x64e   : > { %v1925_v30 = vadd.f32 %v1923_v31, %v1919_v29 }
 0x650   : > { %v1926_v37 = vmax.f32 %v1925_v30, 0.0 }
 0x652   : > { %1981 = vmatmul.f32.vlgmr.msrb.gmra.mxu2 %v1926_v37  ;;  %2001 = vmatmul.f32.vlgmr.msrb.gmra.mxu3 %v1926_v37 }
 0x6d5   : > { %v1982_v48 = vpop.f32.mrf.mxu2  ;;  %v2002_v57 = vpop.f32.mrf.mxu3 }
 0x6d6   : > { %v1983_v56 = vadd.f32 %v1982_v48, %v1961_v46  ;;  %v2003_v58 = vadd.f32 %v2002_v57, %v1962_v47 }
 0x6d8   : > { %v2007_v52 = vsel %vm566_vm0, %v1983_v56, 0.0  ;;  %v2008_v41 = vsel %vm566_vm0, %v2003_v58, 0.0  ;;  %v2012_v54 = vmul.f32 %v1983_v56, %v1983_v56  ;;  %v2013_v55 = vmul.f32 %v2003_v58, %v2003_v58 }
 0x6d9   : > { %v2009_v53 = vadd.f32 %v2008_v41, %v2007_v52 }
 0x6da   : > { %v2014_v59 = vsel %vm566_vm0, %v2012_v54, 0.0  ;;  %v2015_v60 = vsel %vm566_vm0, %v2013_v55, 0.0 }
 0x6db   : > { %2010 = vadd.xlane.f32.xlu1 %v2009_v53  ;;  %v2016_v5 = vadd.f32 %v2015_v60, %v2014_v59 }
 0x6e3   : > { %2017 = vadd.xlane.f32.xlu1 %v2016_v5 }
 0x6fc   : > { %2046 = vperm.xlu1 %2350, %v2006_v10  }
 0x74e   : > { %v2011_v11 = vpop.xlane.xlu1 %2010 }
 0x74f   : > { %v2019_v33 = vmul.f32 0.00390625, %v2011_v11 }
 0x751   : > { %v2021_v35 = vmul.f32 %v2019_v33, %v2019_v33  ;;  %v2034_v9 = vsub.f32 %v1983_v56, %v2019_v33  ;;  %v2035_v12 = vsub.f32 %v2003_v58, %v2019_v33 }
 0x756   : > { %v2018_v34 = vpop.xlane.xlu1 %2017 }
 0x757   : > { %v2020_v63 = vmul.f32 0.00390625, %v2018_v34 }
 0x759   : > { %v2022_v27 = vsub.f32 %v2020_v63, %v2021_v35 }
 0x75b   : > { %v2023_v49 = vadd.f32 1e-05, %v2022_v27 }
 0x75d   : > { %2360 = vrsqrt.f32 %v2023_v49  ;;  %vm2030_vm5 = vweird.f32 %v2023_v49 }
 0x763   : > { %v2361_v50 = vpop.eup %2360 }
 0x764   : > { %v2025_v51 = vmul.f32 %v2361_v50, %v2023_v49  ;;  %vm2031_vm4 = vweird.f32 %v2361_v50 }
 0x765   : > { %vm2032_vm6 = vmor %vm2030_vm5, %vm2031_vm4 }
 0x766   : > { %v2026_v61 = vmul.f32 %v2361_v50, %v2025_v51 }
 0x768   : > { %v2027_v62 = vmul.f32 0.5, %v2026_v61 }
 0x76a   : > { %v2028_v0 = vsub.f32 1.5, %v2027_v62 }
 0x76c   : > { %v2029_v2 = vmul.f32 %v2361_v50, %v2028_v0 }
 0x76e   : > { %v2033_v4 = vsel %vm2032_vm6, %v2361_v50, %v2029_v2  ;;  %v2047_v16 = vpop.permute.xlu1 %2046 }
 0x76f   : > { %v2036_v8 = vmul.f32 %v2033_v4, %v2005_v1 }
 0x771   : > { %2039 = vperm.xlu2 %2352, %v2036_v8  }
 0x7cb   : > { %v2040_v13 = vpop.permute.xlu2 %2039 }
 0x7cc   : > { %v2042_v14 = vmul.f32 %v2040_v13, %v2034_v9  ;;  %v2043_v15 = vmul.f32 %v2040_v13, %v2035_v12 }
 0x7ce   : > { %v2049_v42 = vadd.f32 %v2047_v16, %v2042_v14  ;;  %v2050_v39 = vadd.f32 %v2047_v16, %v2043_v15 }
 0x7d0   : > { %v2051_v43 = vmax.f32 %v2049_v42, 0.0  ;;  %v2052_v17 = vmax.f32 %v2050_v39, 0.0 }
 0x7d2   : > { %v2054_v18 = vadd.f32 %v2052_v17, %v1811_v36  ;;  %v2053_v20 = vadd.f32 %v2051_v43, %v1810_v32 }
 0x7d4   : > { %v2057_v23 = vrot.slane %v2054_v18, 4 }
 0x7d6   : > { %v2058_v24 = vsel %vm566_vm0, %v2053_v20, %v2057_v23 }
 0x7d7   : > { %2060 = vst [vmem:[%s494_s20] sm:$0xff] %v2058_v24 }
 0x7d8   : > { %2449 = shalt.err (!%p2446_p8)
}
 0x7d9   : > { %2285 = dma.vmem_to_hbm [thread:$0]  (%p2622_p5), %s2076_s26, 128, %s2078_s29, %s2062_s17  }
 0x7da PF: > { %s3195_s21 = sld [smem:[#allocation11_spill]]  ;;  %p2302_p9 = scmp.ge.s32.totalorder %s2492_s16, 2 }
 0x7dc   : > { %p2295_p10 = pnand %p2302_p9, %p2626_p6 }
 0x7de   : > { %p2296_p11 = pneg %p2295_p10 }
 0x7e0   : > { %s2089_s24 = sand.u32 1, %s3195_s21  }
 0x7e1   : > { %s2090_s20 = scalar_lea.sflag [#allocation4], %s2089_s24 }
 0x7e2   : > { %2475 = dma.done.wait (%p2296_p11), %s2090_s20, 128  }
 0x7e3   : > { %2477 = vsyncadd (%p2296_p11), %s2090_s20, 4294967168  ;;  %s3197_s16 = sld [smem:[#allocation13_spill]]  ;;  %s3200_s29 = smov %s2484_s30 }
 0x7e4   : > { %s3198_s6 = sld [smem:[#allocation12_spill]] }
 0x7e5   : > { %s3199_s15 = sld [smem:[#allocation14_spill]] }
 0x7e9   : > { %p26_p12 = scmp.ge.s32.totalorder %s3197_s16, 4  }
 0x7ea   : > { %s3201_s30 = smov %s3198_s6 }
 0x7eb   :  { %28 = sbr.rel (!%p26_p12) target bundleno = 7 (0x7), region = 148 }
 0x7f0   :  { %2096 = vsyncpa [#allocation3], 1 }
 0x7f1   :  { %2098 = vsyncpa [#allocation3 + $0x1], 1 }
 0x7f2   :  { %2099 = vsyncpa [#allocation6], 1 }
 0x7f3   :  { %2100 = vsyncpa [#allocation4], 1 }
 0x7f4   :  { %2102 = vsyncpa [#allocation4 + $0x1], 1 }

</bundles_post_ra>
